<compile_context>
chip_gen: v5e
topology: v5e:2x2
jax: 0.10.0
libtpu: 0.0.40
codegen_flags: <defaults>
</compile_context>

<pallas_src>
import functools
import math

import jax
import jax.numpy as jnp
from jax import lax
from jax.experimental import pallas as pl
from jax.experimental.pallas import tpu as pltpu

_LN_EPS = 1e-5
_CPARAMS_1D = pltpu.CompilerParams(dimension_semantics=("arbitrary",))


# ----------------------------- in-kernel helpers -----------------------------

def _layernorm(z, gamma, beta, eps=_LN_EPS):
    mean = jnp.mean(z, axis=-1, keepdims=True)
    var = jnp.mean((z - mean) ** 2, axis=-1, keepdims=True)   # biased, like nn.LayerNorm
    return (z - mean) * lax.rsqrt(var + eps) * gamma + beta


# ----------------------------- Pallas kernels -----------------------------

def _attn_block_kernel(xq_ref, xkv_ref, kpad_ref, wqkv_ref, bqkv_ref,
                       wo_ref, bo_ref, g_ref, be_ref, *out_refs,
                       B, Sq, Sk, n_heads, causal, is_self, emit_attn, eps):
    """Fused: [QKV proj] -> per-head attention -> out proj -> residual -> LN."""
    o_ref = out_refs[0]
    attn_ref = out_refs[1] if emit_attn else None

    D = wqkv_ref.shape[0]
    Dh = D // n_heads
    inv_scale = 1.0 / math.sqrt(Dh)

    wqkv = wqkv_ref[...]                   # (D, 3D)
    bqkv = bqkv_ref[...]                   # (1, 3D)
    wo = wo_ref[...]                       # (D, D)
    bo = bo_ref[...]                       # (1, D)
    gamma = g_ref[...]                     # (1, D)
    beta = be_ref[...]                     # (1, D)

    if not is_self:
        wq_part = wqkv[:, 0:D]
        wkv_part = wqkv[:, D:3 * D]
        bq_part = bqkv[:, 0:D]
        bkv_part = bqkv[:, D:3 * D]

    if causal:
        row_ids = lax.broadcasted_iota(jnp.int32, (Sq, Sk), 0)
        col_ids = lax.broadcasted_iota(jnp.int32, (Sq, Sk), 1)
        causal_ok = col_ids <= row_ids

    for b in range(B):
        xq_b = xq_ref[b]                   # (Sq, D)

        if is_self:
            qkv_b = jnp.dot(xq_b, wqkv, preferred_element_type=jnp.float32) + bqkv
            q_b = qkv_b[:, 0:D]
            k_b = qkv_b[:, D:2 * D]
            v_b = qkv_b[:, 2 * D:3 * D]
        else:
            xkv_b = xkv_ref[b]             # (Sk, D)
            q_b = jnp.dot(xq_b, wq_part, preferred_element_type=jnp.float32) + bq_part
            kv_b = jnp.dot(xkv_b, wkv_part, preferred_element_type=jnp.float32) + bkv_part
            k_b = kv_b[:, 0:D]
            v_b = kv_b[:, D:2 * D]

        valid = jnp.broadcast_to(kpad_ref[b] > 0.5, (Sq, Sk))   # key-padding mask
        if causal:
            valid = jnp.logical_and(valid, causal_ok)

        acc = None
        for h in range(n_heads):
            qh = q_b[:, h * Dh:(h + 1) * Dh]                 # (Sq, Dh)
            kh = k_b[:, h * Dh:(h + 1) * Dh]                 # (Sk, Dh)
            vh = v_b[:, h * Dh:(h + 1) * Dh]                 # (Sk, Dh)
            s = jnp.dot(qh, kh.T, preferred_element_type=jnp.float32) * inv_scale
            s = jnp.where(valid, s, -1.0e10)
            m = jnp.max(s, axis=-1, keepdims=True)
            e = jnp.exp(s - m)
            attn = e * pl.reciprocal(jnp.sum(e, axis=-1, keepdims=True), approx=True)
            if emit_attn:
                attn_ref[b, h, :, :] = attn
            ctx_h = jnp.dot(attn, vh, preferred_element_type=jnp.float32)   # (Sq, Dh)
            # Fold the output projection per head: ctx @ Wo == sum_h ctx_h @ Wo[h*Dh:]
            part = jnp.dot(ctx_h, wo[h * Dh:(h + 1) * Dh, :],
                           preferred_element_type=jnp.float32)              # (Sq, D)
            acc = part if acc is None else acc + part

        y_b = acc + bo
        z_b = xq_b + y_b                      # residual
        o_ref[b] = _layernorm(z_b, gamma, beta, eps)


def attention_block(xq, xkv, key_pad, attn_p, norm_p, n_heads, *,
                    causal, is_self, emit_attn):
    """xq: (B,Sq,D), xkv: (B,Sk,D), key_pad: (B,1,Sk) f32 (1.0 == valid)."""
    B, Sq, D = xq.shape
    Sk = xkv.shape[1]

    kernel = functools.partial(
        _attn_block_kernel, B=B, Sq=Sq, Sk=Sk, n_heads=n_heads,
        causal=causal, is_self=is_self, emit_attn=emit_attn, eps=_LN_EPS)

    in_specs = [
        pl.BlockSpec((B, Sq, D), lambda i: (0, 0, 0)),
        pl.BlockSpec((B, Sk, D), lambda i: (0, 0, 0)),
        pl.BlockSpec((B, 1, Sk), lambda i: (0, 0, 0)),
        pl.BlockSpec((D, 3 * D), lambda i: (0, 0)),
        pl.BlockSpec((1, 3 * D), lambda i: (0, 0)),
        pl.BlockSpec((D, D), lambda i: (0, 0)),
        pl.BlockSpec((1, D), lambda i: (0, 0)),
        pl.BlockSpec((1, D), lambda i: (0, 0)),
        pl.BlockSpec((1, D), lambda i: (0, 0)),
    ]
    args = (xq, xkv, key_pad,
            attn_p["wqkv"], attn_p["bqkv"].reshape(1, 3 * D),
            attn_p["wo"], attn_p["bo"].reshape(1, D),
            norm_p["gamma"].reshape(1, D), norm_p["beta"].reshape(1, D))

    if emit_attn:
        out_shape = (jax.ShapeDtypeStruct((B, Sq, D), jnp.float32),
                     jax.ShapeDtypeStruct((B, n_heads, Sq, Sk), jnp.float32))
        out_specs = (pl.BlockSpec((B, Sq, D), lambda i: (0, 0, 0)),
                     pl.BlockSpec((B, n_heads, Sq, Sk), lambda i: (0, 0, 0, 0)))
        out, attn = pl.pallas_call(
            kernel, out_shape=out_shape, grid=(1,),
            in_specs=in_specs, out_specs=out_specs,
            compiler_params=_CPARAMS_1D)(*args)
        return out, attn
    out_shape = jax.ShapeDtypeStruct((B, Sq, D), jnp.float32)
    out_specs = pl.BlockSpec((B, Sq, D), lambda i: (0, 0, 0))
    out = pl.pallas_call(
        kernel, out_shape=out_shape, grid=(1,),
        in_specs=in_specs, out_specs=out_specs,
        compiler_params=_CPARAMS_1D)(*args)
    return out


def _ffn_block_kernel(x_ref, w0_ref, b0_ref, w1_ref, b1_ref, g_ref, be_ref,
                      o_ref, *, eps):
    """Fused: FF0 + ReLU + FF1 + residual + layernorm."""
    x = x_ref[...]                                            # (M, D)
    h = jnp.dot(x, w0_ref[...], preferred_element_type=jnp.float32) + b0_ref[...]
    h = jnp.maximum(h, 0.0)
    y = jnp.dot(h, w1_ref[...], preferred_element_type=jnp.float32) + b1_ref[...]
    o_ref[...] = _layernorm(x + y, g_ref[...], be_ref[...], eps)


def ffn_block(x, pf_p, norm_p):
    B, S, D = x.shape
    PF = pf_p["w0"].shape[1]
    x2 = x.reshape(B * S, D)
    out = pl.pallas_call(
        functools.partial(_ffn_block_kernel, eps=_LN_EPS),
        out_shape=jax.ShapeDtypeStruct((B * S, D), jnp.float32),
        grid=(1,),
        in_specs=[
            pl.BlockSpec((B * S, D), lambda i: (0, 0)),
            pl.BlockSpec((D, PF), lambda i: (0, 0)),
            pl.BlockSpec((1, PF), lambda i: (0, 0)),
            pl.BlockSpec((PF, D), lambda i: (0, 0)),
            pl.BlockSpec((1, D), lambda i: (0, 0)),
            pl.BlockSpec((1, D), lambda i: (0, 0)),
            pl.BlockSpec((1, D), lambda i: (0, 0)),
        ],
        out_specs=pl.BlockSpec((B * S, D), lambda i: (0, 0)),
        compiler_params=_CPARAMS_1D,
    )(x2, pf_p["w0"], pf_p["b0"].reshape(1, PF),
      pf_p["w1"], pf_p["b1"].reshape(1, D),
      norm_p["gamma"].reshape(1, D), norm_p["beta"].reshape(1, D))
    return out.reshape(B, S, D)


def _linear_kernel(x_ref, w_ref, b_ref, o_ref):
    o_ref[...] = (jnp.dot(x_ref[...], w_ref[...],
                          preferred_element_type=jnp.float32) + b_ref[...])


def linear(x2d, w, b):
    """x2d: (M, K), w: (K, N), b: (N,) -> (M, N)."""
    M, K = x2d.shape
    N = w.shape[1]
    return pl.pallas_call(
        _linear_kernel,
        out_shape=jax.ShapeDtypeStruct((M, N), jnp.float32),
        grid=(1,),
        in_specs=[
            pl.BlockSpec((M, K), lambda i: (0, 0)),
            pl.BlockSpec((K, N), lambda i: (0, 0)),
            pl.BlockSpec((1, N), lambda i: (0, 0)),
        ],
        out_specs=pl.BlockSpec((M, N), lambda i: (0, 0)),
        compiler_params=_CPARAMS_1D,
    )(x2d, w, b.reshape(1, N))


# ----------------------------- model (glue) -----------------------------

def encoder(p, tokens, inp_pad, n_heads, hidden_dim):
    B, S = tokens.shape
    # TODO(synk): embedding gather kept as plain-JAX glue (no matmul hot path).
    tok = jnp.take(p["tok_emb"], tokens, axis=0)
    pos = jnp.take(p["pos_emb"], jnp.arange(S), axis=0)[None, :, :]
    x = tok * math.sqrt(hidden_dim) + pos
    for lp in p["layers"]:
        x = attention_block(x, x, inp_pad, lp["self_attn"], lp["self_attn_norm"],
                            n_heads, causal=False, is_self=True, emit_attn=False)
        x = ffn_block(x, lp["pf"], lp["pf_norm"])
    return x


def decoder(p, tokens, encd, tar_pad, inp_pad, n_heads, hidden_dim):
    B, S = tokens.shape
    tok = jnp.take(p["tok_emb"], tokens, axis=0)
    pos = jnp.take(p["pos_emb"], jnp.arange(S), axis=0)[None, :, :]
    x = tok * math.sqrt(hidden_dim) + pos
    attention = None
    n_layers = len(p["layers"])
    for li, lp in enumerate(p["layers"]):
        x = attention_block(x, x, tar_pad, lp["self_attn"], lp["self_attn_norm"],
                            n_heads, causal=True, is_self=True, emit_attn=False)
        if li == n_layers - 1:
            # Only the final cross-attention map is returned by the module.
            x, attention = attention_block(
                x, encd, inp_pad, lp["encd_attn"], lp["encd_attn_norm"],
                n_heads, causal=False, is_self=False, emit_attn=True)
        else:
            x = attention_block(
                x, encd, inp_pad, lp["encd_attn"], lp["encd_attn_norm"],
                n_heads, causal=False, is_self=False, emit_attn=False)
        x = ffn_block(x, lp["pf"], lp["pf_norm"])
    B_, S_, D_ = x.shape
    out = linear(x.reshape(B_ * S_, D_), p["w_out"], p["b_out"]).reshape(B_, S_, -1)
    return out, attention


def transformer_forward(params, inp, tar, pad_idx, n_heads, hidden_dim):
    # Compact key-padding rows; causal part of the target mask is built in-kernel.
    inp_pad = (inp != pad_idx).astype(jnp.float32)[:, None, :]   # (B, 1, S_in)
    tar_pad = (tar != pad_idx).astype(jnp.float32)[:, None, :]   # (B, 1, S_tar)
    enc_out = encoder(params["encoder"], inp, inp_pad, n_heads, hidden_dim)
    out, attention = decoder(params["decoder"], tar, enc_out, tar_pad, inp_pad,
                             n_heads, hidden_dim)
    return out, attention


# ----------------------------- parameter init -----------------------------

def _init_linear(key, din, dout):
    k1, k2 = jax.random.split(key)
    bound = 1.0 / math.sqrt(din)
    w = jax.random.uniform(k1, (din, dout), jnp.float32, -bound, bound)
    b = jax.random.uniform(k2, (dout,), jnp.float32, -bound, bound)
    return w, b


def _init_mha(key, d):
    ks = jax.random.split(key, 4)
    wq, bq = _init_linear(ks[0], d, d)
    wk, bk = _init_linear(ks[1], d, d)
    wv, bv = _init_linear(ks[2], d, d)
    wo, bo = _init_linear(ks[3], d, d)
    return dict(wqkv=jnp.concatenate([wq, wk, wv], axis=1),
                bqkv=jnp.concatenate([bq, bk, bv], axis=0),
                wo=wo, bo=bo)


def _init_ln(d):
    return dict(gamma=jnp.ones((d,), jnp.float32), beta=jnp.zeros((d,), jnp.float32))


def _init_pf(key, d, pf):
    k0, k1 = jax.random.split(key)
    w0, b0 = _init_linear(k0, d, pf)
    w1, b1 = _init_linear(k1, pf, d)
    return dict(w0=w0, b0=b0, w1=w1, b1=b1)


def _init_enc_layer(key, d, pf):
    k0, k1 = jax.random.split(key)
    return dict(self_attn=_init_mha(k0, d), self_attn_norm=_init_ln(d),
                pf=_init_pf(k1, d, pf), pf_norm=_init_ln(d))


def _init_dec_layer(key, d, pf):
    k0, k1, k2 = jax.random.split(key, 3)
    return dict(self_attn=_init_mha(k0, d), self_attn_norm=_init_ln(d),
                encd_attn=_init_mha(k1, d), encd_attn_norm=_init_ln(d),
                pf=_init_pf(k2, d, pf), pf_norm=_init_ln(d))


def init_transformer(key, input_dim, output_dim, n_layers, hidden_dim, pf_dim,
                     in_seq_len, out_seq_len):
    keys = jax.random.split(key, 6 + 2 * n_layers)
    enc = dict(
        tok_emb=jax.random.normal(keys[0], (input_dim, hidden_dim), jnp.float32),
        pos_emb=jax.random.normal(keys[1], (in_seq_len, hidden_dim), jnp.float32),
        layers=[_init_enc_layer(keys[6 + i], hidden_dim, pf_dim)
                for i in range(n_layers)],
    )
    w_out, b_out = _init_linear(keys[4], hidden_dim, output_dim)
    dec = dict(
        tok_emb=jax.random.normal(keys[2], (output_dim, hidden_dim), jnp.float32),
        pos_emb=jax.random.normal(keys[3], (out_seq_len, hidden_dim), jnp.float32),
        layers=[_init_dec_layer(keys[6 + n_layers + i], hidden_dim, pf_dim)
                for i in range(n_layers)],
        w_out=w_out, b_out=b_out,
    )
    return dict(encoder=enc, decoder=dec)


# ----------------------------- main -----------------------------

if __name__ == "__main__":
    # Small config consistent with the PyTorch module.
    input_dim = 50      # encoder vocab
    output_dim = 60     # decoder vocab
    n_layers = 2
    hidden_dim = 32
    n_heads = 4
    pf_dim = 64
    in_seq_len = 16     # max positions (encoder)
    out_seq_len = 16    # max positions (decoder)
    pad_idx = 0

    B, S_in, S_tar = 2, 12, 10

    root = jax.random.PRNGKey(0)
    k_params, k_inp, k_tar = jax.random.split(root, 3)
    params = init_transformer(k_params, input_dim, output_dim, n_layers,
                              hidden_dim, pf_dim, in_seq_len, out_seq_len)

    inp = jax.random.randint(k_inp, (B, S_in), 1, input_dim, dtype=jnp.int32)
    tar = jax.random.randint(k_tar, (B, S_tar), 1, output_dim, dtype=jnp.int32)
    # add some padding to exercise the masks
    inp = inp.at[0, -3:].set(pad_idx)
    tar = tar.at[1, -2:].set(pad_idx)

    out, attention = transformer_forward(params, inp, tar, pad_idx,
                                         n_heads, hidden_dim)
    out = jax.block_until_ready(out)
    attention = jax.block_until_ready(attention)

    assert out.shape == (B, S_tar, output_dim), out.shape
    assert attention.shape == (B, n_heads, S_tar, S_in), attention.shape
    assert bool(jnp.all(jnp.isfinite(out))) and bool(jnp.all(jnp.isfinite(attention)))
    print("KERNEL_OK")
</pallas_src>

<mosaic_0001>
module attributes {stable_mosaic.version = 11 : i64} {
  func.func @_attn_block_kernel(%arg0: i32, %arg1: memref<2x12x32xf32, #tpu.memory_space<vmem>>, %arg2: memref<2x12x32xf32, #tpu.memory_space<vmem>>, %arg3: memref<2x1x12xf32, #tpu.memory_space<vmem>>, %arg4: memref<32x96xf32, #tpu.memory_space<vmem>>, %arg5: memref<1x96xf32, #tpu.memory_space<vmem>>, %arg6: memref<32x32xf32, #tpu.memory_space<vmem>>, %arg7: memref<1x32xf32, #tpu.memory_space<vmem>>, %arg8: memref<1x32xf32, #tpu.memory_space<vmem>>, %arg9: memref<1x32xf32, #tpu.memory_space<vmem>>, %arg10: memref<2x12x32xf32, #tpu.memory_space<vmem>>) attributes {dimension_semantics = [#tpu.dimension_semantics<arbitrary>], iteration_bounds = array<i64: 1>, scalar_prefetch = 0 : i64, scratch_operands = 0 : i64, tpu.core_type = #tpu.core_type<tc>, window_params = [{pipeline_mode = #tpu.pipeline_mode<synchronous>, transform_indices = @transform_0, window_bounds = array<i64: 2, 12, 32>}, {pipeline_mode = #tpu.pipeline_mode<synchronous>, transform_indices = @transform_1, window_bounds = array<i64: 2, 12, 32>}, {pipeline_mode = #tpu.pipeline_mode<synchronous>, transform_indices = @transform_2, window_bounds = array<i64: 2, 1, 12>}, {pipeline_mode = #tpu.pipeline_mode<synchronous>, transform_indices = @transform_3, window_bounds = array<i64: 32, 96>}, {pipeline_mode = #tpu.pipeline_mode<synchronous>, transform_indices = @transform_4, window_bounds = array<i64: 1, 96>}, {pipeline_mode = #tpu.pipeline_mode<synchronous>, transform_indices = @transform_5, window_bounds = array<i64: 32, 32>}, {pipeline_mode = #tpu.pipeline_mode<synchronous>, transform_indices = @transform_6, window_bounds = array<i64: 1, 32>}, {pipeline_mode = #tpu.pipeline_mode<synchronous>, transform_indices = @transform_7, window_bounds = array<i64: 1, 32>}, {pipeline_mode = #tpu.pipeline_mode<synchronous>, transform_indices = @transform_8, window_bounds = array<i64: 1, 32>}, {pipeline_mode = #tpu.pipeline_mode<synchronous>, transform_indices = @transform_9, window_bounds = array<i64: 2, 12, 32>}]} {
    %c0 = arith.constant 0 : index
    %c0_0 = arith.constant 0 : index
    %0 = vector.load %arg4[%c0, %c0_0] : memref<32x96xf32, #tpu.memory_space<vmem>>, vector<32x96xf32>
    %c0_1 = arith.constant 0 : index
    %c0_2 = arith.constant 0 : index
    %1 = vector.load %arg5[%c0_1, %c0_2] : memref<1x96xf32, #tpu.memory_space<vmem>>, vector<1x96xf32>
    %c0_3 = arith.constant 0 : index
    %c0_4 = arith.constant 0 : index
    %2 = vector.load %arg6[%c0_3, %c0_4] : memref<32x32xf32, #tpu.memory_space<vmem>>, vector<32x32xf32>
    %c0_5 = arith.constant 0 : index
    %c0_6 = arith.constant 0 : index
    %3 = vector.load %arg7[%c0_5, %c0_6] : memref<1x32xf32, #tpu.memory_space<vmem>>, vector<1x32xf32>
    %c0_7 = arith.constant 0 : index
    %c0_8 = arith.constant 0 : index
    %4 = vector.load %arg8[%c0_7, %c0_8] : memref<1x32xf32, #tpu.memory_space<vmem>>, vector<1x32xf32>
    %c0_9 = arith.constant 0 : index
    %c0_10 = arith.constant 0 : index
    %5 = vector.load %arg9[%c0_9, %c0_10] : memref<1x32xf32, #tpu.memory_space<vmem>>, vector<1x32xf32>
    %c0_11 = arith.constant 0 : index
    %c0_12 = arith.constant 0 : index
    %c0_13 = arith.constant 0 : index
    %6 = vector.load %arg1[%c0_11, %c0_12, %c0_13] : memref<2x12x32xf32, #tpu.memory_space<vmem>>, vector<1x12x32xf32>
    %7 = vector.shape_cast %6 : vector<1x12x32xf32> to vector<12x32xf32>
    %cst = arith.constant dense<0.000000e+00> : vector<12x96xf32>
    %8 = tpu.matmul %7, %0, %cst {dimension_numbers = #tpu.dot_dimension_numbers<[1], [0], [0], [1], [0, 0, 1, 1], [], []>} : vector<12x32xf32>, vector<32x96xf32>, vector<12x96xf32> -> vector<12x96xf32>
    %9 = vector.broadcast %1 : vector<1x96xf32> to vector<12x96xf32>
    %10 = arith.addf %8, %9 : vector<12x96xf32>
    %11 = vector.extract_strided_slice %10 {offsets = [0, 0], sizes = [12, 32], strides = [1, 1]} : vector<12x96xf32> to vector<12x32xf32>
    %12 = vector.extract_strided_slice %10 {offsets = [0, 32], sizes = [12, 32], strides = [1, 1]} : vector<12x96xf32> to vector<12x32xf32>
    %13 = vector.extract_strided_slice %10 {offsets = [0, 64], sizes = [12, 32], strides = [1, 1]} : vector<12x96xf32> to vector<12x32xf32>
    %c0_14 = arith.constant 0 : index
    %c0_15 = arith.constant 0 : index
    %c0_16 = arith.constant 0 : index
    %14 = vector.load %arg3[%c0_14, %c0_15, %c0_16] : memref<2x1x12xf32, #tpu.memory_space<vmem>>, vector<1x1x12xf32>
    %15 = vector.shape_cast %14 : vector<1x1x12xf32> to vector<1x12xf32>
    %cst_17 = arith.constant 5.000000e-01 : f32
    %16 = vector.broadcast %cst_17 : f32 to vector<1x12xf32>
    %17 = arith.cmpf ogt, %15, %16 : vector<1x12xf32>
    %18 = vector.shape_cast %17 : vector<1x12xi1> to vector<1x12xi1>
    %19 = vector.broadcast %18 : vector<1x12xi1> to vector<12x12xi1>
    %20 = vector.extract_strided_slice %11 {offsets = [0, 0], sizes = [12, 8], strides = [1, 1]} : vector<12x32xf32> to vector<12x8xf32>
    %21 = vector.extract_strided_slice %12 {offsets = [0, 0], sizes = [12, 8], strides = [1, 1]} : vector<12x32xf32> to vector<12x8xf32>
    %22 = vector.extract_strided_slice %13 {offsets = [0, 0], sizes = [12, 8], strides = [1, 1]} : vector<12x32xf32> to vector<12x8xf32>
    %23 = tpu.transpose %21, [1, 0] : vector<12x8xf32> -> vector<8x12xf32>
    %cst_18 = arith.constant dense<0.000000e+00> : vector<12x12xf32>
    %24 = tpu.matmul %20, %23, %cst_18 {dimension_numbers = #tpu.dot_dimension_numbers<[1], [0], [0], [1], [0, 0, 1, 1], [], []>} : vector<12x8xf32>, vector<8x12xf32>, vector<12x12xf32> -> vector<12x12xf32>
    %cst_19 = arith.constant 0.353553385 : f32
    %25 = vector.broadcast %cst_19 : f32 to vector<12x12xf32>
    %26 = arith.mulf %24, %25 : vector<12x12xf32>
    %cst_20 = arith.constant -1.000000e+10 : f32
    %27 = vector.broadcast %cst_20 : f32 to vector<12x12xf32>
    %28 = arith.select %19, %26, %27 : vector<12x12xi1>, vector<12x12xf32>
    %cst_21 = arith.constant dense<0xFF800000> : vector<12xf32>
    %29 = vector.multi_reduction <maximumf>, %28, %cst_21 [1] : vector<12x12xf32> to vector<12xf32>
    %30 = vector.shape_cast %29 : vector<12xf32> to vector<12x1xf32>
    %31 = vector.broadcast %30 : vector<12x1xf32> to vector<12x12xf32>
    %32 = arith.subf %28, %31 : vector<12x12xf32>
    %33 = math.exp %32 : vector<12x12xf32>
    %cst_22 = arith.constant dense<0.000000e+00> : vector<12xf32>
    %34 = vector.multi_reduction <add>, %33, %cst_22 [1] : vector<12x12xf32> to vector<12xf32>
    %35 = vector.shape_cast %34 : vector<12xf32> to vector<12x1xf32>
    %36 = tpu.reciprocal %35 {approx = true} : vector<12x1xf32> -> vector<12x1xf32>
    %37 = vector.broadcast %36 : vector<12x1xf32> to vector<12x12xf32>
    %38 = arith.mulf %33, %37 : vector<12x12xf32>
    %cst_23 = arith.constant dense<0.000000e+00> : vector<12x8xf32>
    %39 = tpu.matmul %38, %22, %cst_23 {dimension_numbers = #tpu.dot_dimension_numbers<[1], [0], [0], [1], [0, 0, 1, 1], [], []>} : vector<12x12xf32>, vector<12x8xf32>, vector<12x8xf32> -> vector<12x8xf32>
    %40 = vector.extract_strided_slice %2 {offsets = [0, 0], sizes = [8, 32], strides = [1, 1]} : vector<32x32xf32> to vector<8x32xf32>
    %cst_24 = arith.constant dense<0.000000e+00> : vector<12x32xf32>
    %41 = tpu.matmul %39, %40, %cst_24 {dimension_numbers = #tpu.dot_dimension_numbers<[1], [0], [0], [1], [0, 0, 1, 1], [], []>} : vector<12x8xf32>, vector<8x32xf32>, vector<12x32xf32> -> vector<12x32xf32>
    %42 = vector.extract_strided_slice %11 {offsets = [0, 8], sizes = [12, 8], strides = [1, 1]} : vector<12x32xf32> to vector<12x8xf32>
    %43 = vector.extract_strided_slice %12 {offsets = [0, 8], sizes = [12, 8], strides = [1, 1]} : vector<12x32xf32> to vector<12x8xf32>
    %44 = vector.extract_strided_slice %13 {offsets = [0, 8], sizes = [12, 8], strides = [1, 1]} : vector<12x32xf32> to vector<12x8xf32>
    %45 = tpu.transpose %43, [1, 0] : vector<12x8xf32> -> vector<8x12xf32>
    %cst_25 = arith.constant dense<0.000000e+00> : vector<12x12xf32>
    %46 = tpu.matmul %42, %45, %cst_25 {dimension_numbers = #tpu.dot_dimension_numbers<[1], [0], [0], [1], [0, 0, 1, 1], [], []>} : vector<12x8xf32>, vector<8x12xf32>, vector<12x12xf32> -> vector<12x12xf32>
    %cst_26 = arith.constant 0.353553385 : f32
    %47 = vector.broadcast %cst_26 : f32 to vector<12x12xf32>
    %48 = arith.mulf %46, %47 : vector<12x12xf32>
    %cst_27 = arith.constant -1.000000e+10 : f32
    %49 = vector.broadcast %cst_27 : f32 to vector<12x12xf32>
    %50 = arith.select %19, %48, %49 : vector<12x12xi1>, vector<12x12xf32>
    %cst_28 = arith.constant dense<0xFF800000> : vector<12xf32>
    %51 = vector.multi_reduction <maximumf>, %50, %cst_28 [1] : vector<12x12xf32> to vector<12xf32>
    %52 = vector.shape_cast %51 : vector<12xf32> to vector<12x1xf32>
    %53 = vector.broadcast %52 : vector<12x1xf32> to vector<12x12xf32>
    %54 = arith.subf %50, %53 : vector<12x12xf32>
    %55 = math.exp %54 : vector<12x12xf32>
    %cst_29 = arith.constant dense<0.000000e+00> : vector<12xf32>
    %56 = vector.multi_reduction <add>, %55, %cst_29 [1] : vector<12x12xf32> to vector<12xf32>
    %57 = vector.shape_cast %56 : vector<12xf32> to vector<12x1xf32>
    %58 = tpu.reciprocal %57 {approx = true} : vector<12x1xf32> -> vector<12x1xf32>
    %59 = vector.broadcast %58 : vector<12x1xf32> to vector<12x12xf32>
    %60 = arith.mulf %55, %59 : vector<12x12xf32>
    %cst_30 = arith.constant dense<0.000000e+00> : vector<12x8xf32>
    %61 = tpu.matmul %60, %44, %cst_30 {dimension_numbers = #tpu.dot_dimension_numbers<[1], [0], [0], [1], [0, 0, 1, 1], [], []>} : vector<12x12xf32>, vector<12x8xf32>, vector<12x8xf32> -> vector<12x8xf32>
    %62 = vector.extract_strided_slice %2 {offsets = [8, 0], sizes = [8, 32], strides = [1, 1]} : vector<32x32xf32> to vector<8x32xf32>
    %cst_31 = arith.constant dense<0.000000e+00> : vector<12x32xf32>
    %63 = tpu.matmul %61, %62, %cst_31 {dimension_numbers = #tpu.dot_dimension_numbers<[1], [0], [0], [1], [0, 0, 1, 1], [], []>} : vector<12x8xf32>, vector<8x32xf32>, vector<12x32xf32> -> vector<12x32xf32>
    %64 = arith.addf %41, %63 : vector<12x32xf32>
    %65 = vector.extract_strided_slice %11 {offsets = [0, 16], sizes = [12, 8], strides = [1, 1]} : vector<12x32xf32> to vector<12x8xf32>
    %66 = vector.extract_strided_slice %12 {offsets = [0, 16], sizes = [12, 8], strides = [1, 1]} : vector<12x32xf32> to vector<12x8xf32>
    %67 = vector.extract_strided_slice %13 {offsets = [0, 16], sizes = [12, 8], strides = [1, 1]} : vector<12x32xf32> to vector<12x8xf32>
    %68 = tpu.transpose %66, [1, 0] : vector<12x8xf32> -> vector<8x12xf32>
    %cst_32 = arith.constant dense<0.000000e+00> : vector<12x12xf32>
    %69 = tpu.matmul %65, %68, %cst_32 {dimension_numbers = #tpu.dot_dimension_numbers<[1], [0], [0], [1], [0, 0, 1, 1], [], []>} : vector<12x8xf32>, vector<8x12xf32>, vector<12x12xf32> -> vector<12x12xf32>
    %cst_33 = arith.constant 0.353553385 : f32
    %70 = vector.broadcast %cst_33 : f32 to vector<12x12xf32>
    %71 = arith.mulf %69, %70 : vector<12x12xf32>
    %cst_34 = arith.constant -1.000000e+10 : f32
    %72 = vector.broadcast %cst_34 : f32 to vector<12x12xf32>
    %73 = arith.select %19, %71, %72 : vector<12x12xi1>, vector<12x12xf32>
    %cst_35 = arith.constant dense<0xFF800000> : vector<12xf32>
    %74 = vector.multi_reduction <maximumf>, %73, %cst_35 [1] : vector<12x12xf32> to vector<12xf32>
    %75 = vector.shape_cast %74 : vector<12xf32> to vector<12x1xf32>
    %76 = vector.broadcast %75 : vector<12x1xf32> to vector<12x12xf32>
    %77 = arith.subf %73, %76 : vector<12x12xf32>
    %78 = math.exp %77 : vector<12x12xf32>
    %cst_36 = arith.constant dense<0.000000e+00> : vector<12xf32>
    %79 = vector.multi_reduction <add>, %78, %cst_36 [1] : vector<12x12xf32> to vector<12xf32>
    %80 = vector.shape_cast %79 : vector<12xf32> to vector<12x1xf32>
    %81 = tpu.reciprocal %80 {approx = true} : vector<12x1xf32> -> vector<12x1xf32>
    %82 = vector.broadcast %81 : vector<12x1xf32> to vector<12x12xf32>
    %83 = arith.mulf %78, %82 : vector<12x12xf32>
    %cst_37 = arith.constant dense<0.000000e+00> : vector<12x8xf32>
    %84 = tpu.matmul %83, %67, %cst_37 {dimension_numbers = #tpu.dot_dimension_numbers<[1], [0], [0], [1], [0, 0, 1, 1], [], []>} : vector<12x12xf32>, vector<12x8xf32>, vector<12x8xf32> -> vector<12x8xf32>
    %85 = vector.extract_strided_slice %2 {offsets = [16, 0], sizes = [8, 32], strides = [1, 1]} : vector<32x32xf32> to vector<8x32xf32>
    %cst_38 = arith.constant dense<0.000000e+00> : vector<12x32xf32>
    %86 = tpu.matmul %84, %85, %cst_38 {dimension_numbers = #tpu.dot_dimension_numbers<[1], [0], [0], [1], [0, 0, 1, 1], [], []>} : vector<12x8xf32>, vector<8x32xf32>, vector<12x32xf32> -> vector<12x32xf32>
    %87 = arith.addf %64, %86 : vector<12x32xf32>
    %88 = vector.extract_strided_slice %11 {offsets = [0, 24], sizes = [12, 8], strides = [1, 1]} : vector<12x32xf32> to vector<12x8xf32>
    %89 = vector.extract_strided_slice %12 {offsets = [0, 24], sizes = [12, 8], strides = [1, 1]} : vector<12x32xf32> to vector<12x8xf32>
    %90 = vector.extract_strided_slice %13 {offsets = [0, 24], sizes = [12, 8], strides = [1, 1]} : vector<12x32xf32> to vector<12x8xf32>
    %91 = tpu.transpose %89, [1, 0] : vector<12x8xf32> -> vector<8x12xf32>
    %cst_39 = arith.constant dense<0.000000e+00> : vector<12x12xf32>
    %92 = tpu.matmul %88, %91, %cst_39 {dimension_numbers = #tpu.dot_dimension_numbers<[1], [0], [0], [1], [0, 0, 1, 1], [], []>} : vector<12x8xf32>, vector<8x12xf32>, vector<12x12xf32> -> vector<12x12xf32>
    %cst_40 = arith.constant 0.353553385 : f32
    %93 = vector.broadcast %cst_40 : f32 to vector<12x12xf32>
    %94 = arith.mulf %92, %93 : vector<12x12xf32>
    %cst_41 = arith.constant -1.000000e+10 : f32
    %95 = vector.broadcast %cst_41 : f32 to vector<12x12xf32>
    %96 = arith.select %19, %94, %95 : vector<12x12xi1>, vector<12x12xf32>
    %cst_42 = arith.constant dense<0xFF800000> : vector<12xf32>
    %97 = vector.multi_reduction <maximumf>, %96, %cst_42 [1] : vector<12x12xf32> to vector<12xf32>
    %98 = vector.shape_cast %97 : vector<12xf32> to vector<12x1xf32>
    %99 = vector.broadcast %98 : vector<12x1xf32> to vector<12x12xf32>
    %100 = arith.subf %96, %99 : vector<12x12xf32>
    %101 = math.exp %100 : vector<12x12xf32>
    %cst_43 = arith.constant dense<0.000000e+00> : vector<12xf32>
    %102 = vector.multi_reduction <add>, %101, %cst_43 [1] : vector<12x12xf32> to vector<12xf32>
    %103 = vector.shape_cast %102 : vector<12xf32> to vector<12x1xf32>
    %104 = tpu.reciprocal %103 {approx = true} : vector<12x1xf32> -> vector<12x1xf32>
    %105 = vector.broadcast %104 : vector<12x1xf32> to vector<12x12xf32>
    %106 = arith.mulf %101, %105 : vector<12x12xf32>
    %cst_44 = arith.constant dense<0.000000e+00> : vector<12x8xf32>
    %107 = tpu.matmul %106, %90, %cst_44 {dimension_numbers = #tpu.dot_dimension_numbers<[1], [0], [0], [1], [0, 0, 1, 1], [], []>} : vector<12x12xf32>, vector<12x8xf32>, vector<12x8xf32> -> vector<12x8xf32>
    %108 = vector.extract_strided_slice %2 {offsets = [24, 0], sizes = [8, 32], strides = [1, 1]} : vector<32x32xf32> to vector<8x32xf32>
    %cst_45 = arith.constant dense<0.000000e+00> : vector<12x32xf32>
    %109 = tpu.matmul %107, %108, %cst_45 {dimension_numbers = #tpu.dot_dimension_numbers<[1], [0], [0], [1], [0, 0, 1, 1], [], []>} : vector<12x8xf32>, vector<8x32xf32>, vector<12x32xf32> -> vector<12x32xf32>
    %110 = arith.addf %87, %109 : vector<12x32xf32>
    %111 = vector.broadcast %3 : vector<1x32xf32> to vector<12x32xf32>
    %112 = arith.addf %110, %111 : vector<12x32xf32>
    %113 = arith.addf %7, %112 : vector<12x32xf32>
    %cst_46 = arith.constant dense<0.000000e+00> : vector<12xf32>
    %114 = vector.multi_reduction <add>, %113, %cst_46 [1] : vector<12x32xf32> to vector<12xf32>
    %115 = vector.shape_cast %114 : vector<12xf32> to vector<12x1xf32>
    %cst_47 = arith.constant 3.200000e+01 : f32
    %116 = vector.broadcast %cst_47 : f32 to vector<12x1xf32>
    %117 = arith.divf %115, %116 : vector<12x1xf32>
    %118 = vector.broadcast %117 : vector<12x1xf32> to vector<12x32xf32>
    %119 = arith.subf %113, %118 : vector<12x32xf32>
    %120 = arith.mulf %119, %119 : vector<12x32xf32>
    %cst_48 = arith.constant dense<0.000000e+00> : vector<12xf32>
    %121 = vector.multi_reduction <add>, %120, %cst_48 [1] : vector<12x32xf32> to vector<12xf32>
    %122 = vector.shape_cast %121 : vector<12xf32> to vector<12x1xf32>
    %cst_49 = arith.constant 3.200000e+01 : f32
    %123 = vector.broadcast %cst_49 : f32 to vector<12x1xf32>
    %124 = arith.divf %122, %123 : vector<12x1xf32>
    %125 = vector.broadcast %117 : vector<12x1xf32> to vector<12x32xf32>
    %126 = arith.subf %113, %125 : vector<12x32xf32>
    %cst_50 = arith.constant 9.99999974E-6 : f32
    %127 = vector.broadcast %cst_50 : f32 to vector<12x1xf32>
    %128 = arith.addf %124, %127 : vector<12x1xf32>
    %129 = math.rsqrt %128 : vector<12x1xf32>
    %130 = vector.broadcast %129 : vector<12x1xf32> to vector<12x32xf32>
    %131 = arith.mulf %126, %130 : vector<12x32xf32>
    %132 = vector.broadcast %4 : vector<1x32xf32> to vector<12x32xf32>
    %133 = arith.mulf %131, %132 : vector<12x32xf32>
    %134 = vector.broadcast %5 : vector<1x32xf32> to vector<12x32xf32>
    %135 = arith.addf %133, %134 : vector<12x32xf32>
    %c0_51 = arith.constant 0 : index
    %c0_52 = arith.constant 0 : index
    %c0_53 = arith.constant 0 : index
    %136 = vector.load %arg10[%c0_51, %c0_52, %c0_53] : memref<2x12x32xf32, #tpu.memory_space<vmem>>, vector<1x12x32xf32>
    %137 = vector.shape_cast %136 : vector<1x12x32xf32> to vector<12x32xf32>
    %138 = vector.shape_cast %135 : vector<12x32xf32> to vector<1x12x32xf32>
    tpu.vector_store %arg10[%c0_51, %c0_52, %c0_53], %138 {strides = array<i32>} : memref<2x12x32xf32, #tpu.memory_space<vmem>>, vector<1x12x32xf32>,
    %c1 = arith.constant 1 : index
    %c0_54 = arith.constant 0 : index
    %c0_55 = arith.constant 0 : index
    %139 = vector.load %arg1[%c1, %c0_54, %c0_55] : memref<2x12x32xf32, #tpu.memory_space<vmem>>, vector<1x12x32xf32>
    %140 = vector.shape_cast %139 : vector<1x12x32xf32> to vector<12x32xf32>
    %cst_56 = arith.constant dense<0.000000e+00> : vector<12x96xf32>
    %141 = tpu.matmul %140, %0, %cst_56 {dimension_numbers = #tpu.dot_dimension_numbers<[1], [0], [0], [1], [0, 0, 1, 1], [], []>} : vector<12x32xf32>, vector<32x96xf32>, vector<12x96xf32> -> vector<12x96xf32>
    %142 = vector.broadcast %1 : vector<1x96xf32> to vector<12x96xf32>
    %143 = arith.addf %141, %142 : vector<12x96xf32>
    %144 = vector.extract_strided_slice %143 {offsets = [0, 0], sizes = [12, 32], strides = [1, 1]} : vector<12x96xf32> to vector<12x32xf32>
    %145 = vector.extract_strided_slice %143 {offsets = [0, 32], sizes = [12, 32], strides = [1, 1]} : vector<12x96xf32> to vector<12x32xf32>
    %146 = vector.extract_strided_slice %143 {offsets = [0, 64], sizes = [12, 32], strides = [1, 1]} : vector<12x96xf32> to vector<12x32xf32>
    %c1_57 = arith.constant 1 : index
    %c0_58 = arith.constant 0 : index
    %c0_59 = arith.constant 0 : index
    %147 = vector.load %arg3[%c1_57, %c0_58, %c0_59] : memref<2x1x12xf32, #tpu.memory_space<vmem>>, vector<1x1x12xf32>
    %148 = vector.shape_cast %147 : vector<1x1x12xf32> to vector<1x12xf32>
    %cst_60 = arith.constant 5.000000e-01 : f32
    %149 = vector.broadcast %cst_60 : f32 to vector<1x12xf32>
    %150 = arith.cmpf ogt, %148, %149 : vector<1x12xf32>
    %151 = vector.shape_cast %150 : vector<1x12xi1> to vector<1x12xi1>
    %152 = vector.broadcast %151 : vector<1x12xi1> to vector<12x12xi1>
    %153 = vector.extract_strided_slice %144 {offsets = [0, 0], sizes = [12, 8], strides = [1, 1]} : vector<12x32xf32> to vector<12x8xf32>
    %154 = vector.extract_strided_slice %145 {offsets = [0, 0], sizes = [12, 8], strides = [1, 1]} : vector<12x32xf32> to vector<12x8xf32>
    %155 = vector.extract_strided_slice %146 {offsets = [0, 0], sizes = [12, 8], strides = [1, 1]} : vector<12x32xf32> to vector<12x8xf32>
    %156 = tpu.transpose %154, [1, 0] : vector<12x8xf32> -> vector<8x12xf32>
    %cst_61 = arith.constant dense<0.000000e+00> : vector<12x12xf32>
    %157 = tpu.matmul %153, %156, %cst_61 {dimension_numbers = #tpu.dot_dimension_numbers<[1], [0], [0], [1], [0, 0, 1, 1], [], []>} : vector<12x8xf32>, vector<8x12xf32>, vector<12x12xf32> -> vector<12x12xf32>
    %cst_62 = arith.constant 0.353553385 : f32
    %158 = vector.broadcast %cst_62 : f32 to vector<12x12xf32>
    %159 = arith.mulf %157, %158 : vector<12x12xf32>
    %cst_63 = arith.constant -1.000000e+10 : f32
    %160 = vector.broadcast %cst_63 : f32 to vector<12x12xf32>
    %161 = arith.select %152, %159, %160 : vector<12x12xi1>, vector<12x12xf32>
    %cst_64 = arith.constant dense<0xFF800000> : vector<12xf32>
    %162 = vector.multi_reduction <maximumf>, %161, %cst_64 [1] : vector<12x12xf32> to vector<12xf32>
    %163 = vector.shape_cast %162 : vector<12xf32> to vector<12x1xf32>
    %164 = vector.broadcast %163 : vector<12x1xf32> to vector<12x12xf32>
    %165 = arith.subf %161, %164 : vector<12x12xf32>
    %166 = math.exp %165 : vector<12x12xf32>
    %cst_65 = arith.constant dense<0.000000e+00> : vector<12xf32>
    %167 = vector.multi_reduction <add>, %166, %cst_65 [1] : vector<12x12xf32> to vector<12xf32>
    %168 = vector.shape_cast %167 : vector<12xf32> to vector<12x1xf32>
    %169 = tpu.reciprocal %168 {approx = true} : vector<12x1xf32> -> vector<12x1xf32>
    %170 = vector.broadcast %169 : vector<12x1xf32> to vector<12x12xf32>
    %171 = arith.mulf %166, %170 : vector<12x12xf32>
    %cst_66 = arith.constant dense<0.000000e+00> : vector<12x8xf32>
    %172 = tpu.matmul %171, %155, %cst_66 {dimension_numbers = #tpu.dot_dimension_numbers<[1], [0], [0], [1], [0, 0, 1, 1], [], []>} : vector<12x12xf32>, vector<12x8xf32>, vector<12x8xf32> -> vector<12x8xf32>
    %173 = vector.extract_strided_slice %2 {offsets = [0, 0], sizes = [8, 32], strides = [1, 1]} : vector<32x32xf32> to vector<8x32xf32>
    %cst_67 = arith.constant dense<0.000000e+00> : vector<12x32xf32>
    %174 = tpu.matmul %172, %173, %cst_67 {dimension_numbers = #tpu.dot_dimension_numbers<[1], [0], [0], [1], [0, 0, 1, 1], [], []>} : vector<12x8xf32>, vector<8x32xf32>, vector<12x32xf32> -> vector<12x32xf32>
    %175 = vector.extract_strided_slice %144 {offsets = [0, 8], sizes = [12, 8], strides = [1, 1]} : vector<12x32xf32> to vector<12x8xf32>
    %176 = vector.extract_strided_slice %145 {offsets = [0, 8], sizes = [12, 8], strides = [1, 1]} : vector<12x32xf32> to vector<12x8xf32>
    %177 = vector.extract_strided_slice %146 {offsets = [0, 8], sizes = [12, 8], strides = [1, 1]} : vector<12x32xf32> to vector<12x8xf32>
    %178 = tpu.transpose %176, [1, 0] : vector<12x8xf32> -> vector<8x12xf32>
    %cst_68 = arith.constant dense<0.000000e+00> : vector<12x12xf32>
    %179 = tpu.matmul %175, %178, %cst_68 {dimension_numbers = #tpu.dot_dimension_numbers<[1], [0], [0], [1], [0, 0, 1, 1], [], []>} : vector<12x8xf32>, vector<8x12xf32>, vector<12x12xf32> -> vector<12x12xf32>
    %cst_69 = arith.constant 0.353553385 : f32
    %180 = vector.broadcast %cst_69 : f32 to vector<12x12xf32>
    %181 = arith.mulf %179, %180 : vector<12x12xf32>
    %cst_70 = arith.constant -1.000000e+10 : f32
    %182 = vector.broadcast %cst_70 : f32 to vector<12x12xf32>
    %183 = arith.select %152, %181, %182 : vector<12x12xi1>, vector<12x12xf32>
    %cst_71 = arith.constant dense<0xFF800000> : vector<12xf32>
    %184 = vector.multi_reduction <maximumf>, %183, %cst_71 [1] : vector<12x12xf32> to vector<12xf32>
    %185 = vector.shape_cast %184 : vector<12xf32> to vector<12x1xf32>
    %186 = vector.broadcast %185 : vector<12x1xf32> to vector<12x12xf32>
    %187 = arith.subf %183, %186 : vector<12x12xf32>
    %188 = math.exp %187 : vector<12x12xf32>
    %cst_72 = arith.constant dense<0.000000e+00> : vector<12xf32>
    %189 = vector.multi_reduction <add>, %188, %cst_72 [1] : vector<12x12xf32> to vector<12xf32>
    %190 = vector.shape_cast %189 : vector<12xf32> to vector<12x1xf32>
    %191 = tpu.reciprocal %190 {approx = true} : vector<12x1xf32> -> vector<12x1xf32>
    %192 = vector.broadcast %191 : vector<12x1xf32> to vector<12x12xf32>
    %193 = arith.mulf %188, %192 : vector<12x12xf32>
    %cst_73 = arith.constant dense<0.000000e+00> : vector<12x8xf32>
    %194 = tpu.matmul %193, %177, %cst_73 {dimension_numbers = #tpu.dot_dimension_numbers<[1], [0], [0], [1], [0, 0, 1, 1], [], []>} : vector<12x12xf32>, vector<12x8xf32>, vector<12x8xf32> -> vector<12x8xf32>
    %195 = vector.extract_strided_slice %2 {offsets = [8, 0], sizes = [8, 32], strides = [1, 1]} : vector<32x32xf32> to vector<8x32xf32>
    %cst_74 = arith.constant dense<0.000000e+00> : vector<12x32xf32>
    %196 = tpu.matmul %194, %195, %cst_74 {dimension_numbers = #tpu.dot_dimension_numbers<[1], [0], [0], [1], [0, 0, 1, 1], [], []>} : vector<12x8xf32>, vector<8x32xf32>, vector<12x32xf32> -> vector<12x32xf32>
    %197 = arith.addf %174, %196 : vector<12x32xf32>
    %198 = vector.extract_strided_slice %144 {offsets = [0, 16], sizes = [12, 8], strides = [1, 1]} : vector<12x32xf32> to vector<12x8xf32>
    %199 = vector.extract_strided_slice %145 {offsets = [0, 16], sizes = [12, 8], strides = [1, 1]} : vector<12x32xf32> to vector<12x8xf32>
    %200 = vector.extract_strided_slice %146 {offsets = [0, 16], sizes = [12, 8], strides = [1, 1]} : vector<12x32xf32> to vector<12x8xf32>
    %201 = tpu.transpose %199, [1, 0] : vector<12x8xf32> -> vector<8x12xf32>
    %cst_75 = arith.constant dense<0.000000e+00> : vector<12x12xf32>
    %202 = tpu.matmul %198, %201, %cst_75 {dimension_numbers = #tpu.dot_dimension_numbers<[1], [0], [0], [1], [0, 0, 1, 1], [], []>} : vector<12x8xf32>, vector<8x12xf32>, vector<12x12xf32> -> vector<12x12xf32>
    %cst_76 = arith.constant 0.353553385 : f32
    %203 = vector.broadcast %cst_76 : f32 to vector<12x12xf32>
    %204 = arith.mulf %202, %203 : vector<12x12xf32>
    %cst_77 = arith.constant -1.000000e+10 : f32
    %205 = vector.broadcast %cst_77 : f32 to vector<12x12xf32>
    %206 = arith.select %152, %204, %205 : vector<12x12xi1>, vector<12x12xf32>
    %cst_78 = arith.constant dense<0xFF800000> : vector<12xf32>
    %207 = vector.multi_reduction <maximumf>, %206, %cst_78 [1] : vector<12x12xf32> to vector<12xf32>
    %208 = vector.shape_cast %207 : vector<12xf32> to vector<12x1xf32>
    %209 = vector.broadcast %208 : vector<12x1xf32> to vector<12x12xf32>
    %210 = arith.subf %206, %209 : vector<12x12xf32>
    %211 = math.exp %210 : vector<12x12xf32>
    %cst_79 = arith.constant dense<0.000000e+00> : vector<12xf32>
    %212 = vector.multi_reduction <add>, %211, %cst_79 [1] : vector<12x12xf32> to vector<12xf32>
    %213 = vector.shape_cast %212 : vector<12xf32> to vector<12x1xf32>
    %214 = tpu.reciprocal %213 {approx = true} : vector<12x1xf32> -> vector<12x1xf32>
    %215 = vector.broadcast %214 : vector<12x1xf32> to vector<12x12xf32>
    %216 = arith.mulf %211, %215 : vector<12x12xf32>
    %cst_80 = arith.constant dense<0.000000e+00> : vector<12x8xf32>
    %217 = tpu.matmul %216, %200, %cst_80 {dimension_numbers = #tpu.dot_dimension_numbers<[1], [0], [0], [1], [0, 0, 1, 1], [], []>} : vector<12x12xf32>, vector<12x8xf32>, vector<12x8xf32> -> vector<12x8xf32>
    %218 = vector.extract_strided_slice %2 {offsets = [16, 0], sizes = [8, 32], strides = [1, 1]} : vector<32x32xf32> to vector<8x32xf32>
    %cst_81 = arith.constant dense<0.000000e+00> : vector<12x32xf32>
    %219 = tpu.matmul %217, %218, %cst_81 {dimension_numbers = #tpu.dot_dimension_numbers<[1], [0], [0], [1], [0, 0, 1, 1], [], []>} : vector<12x8xf32>, vector<8x32xf32>, vector<12x32xf32> -> vector<12x32xf32>
    %220 = arith.addf %197, %219 : vector<12x32xf32>
    %221 = vector.extract_strided_slice %144 {offsets = [0, 24], sizes = [12, 8], strides = [1, 1]} : vector<12x32xf32> to vector<12x8xf32>
    %222 = vector.extract_strided_slice %145 {offsets = [0, 24], sizes = [12, 8], strides = [1, 1]} : vector<12x32xf32> to vector<12x8xf32>
    %223 = vector.extract_strided_slice %146 {offsets = [0, 24], sizes = [12, 8], strides = [1, 1]} : vector<12x32xf32> to vector<12x8xf32>
    %224 = tpu.transpose %222, [1, 0] : vector<12x8xf32> -> vector<8x12xf32>
    %cst_82 = arith.constant dense<0.000000e+00> : vector<12x12xf32>
    %225 = tpu.matmul %221, %224, %cst_82 {dimension_numbers = #tpu.dot_dimension_numbers<[1], [0], [0], [1], [0, 0, 1, 1], [], []>} : vector<12x8xf32>, vector<8x12xf32>, vector<12x12xf32> -> vector<12x12xf32>
    %cst_83 = arith.constant 0.353553385 : f32
    %226 = vector.broadcast %cst_83 : f32 to vector<12x12xf32>
    %227 = arith.mulf %225, %226 : vector<12x12xf32>
    %cst_84 = arith.constant -1.000000e+10 : f32
    %228 = vector.broadcast %cst_84 : f32 to vector<12x12xf32>
    %229 = arith.select %152, %227, %228 : vector<12x12xi1>, vector<12x12xf32>
    %cst_85 = arith.constant dense<0xFF800000> : vector<12xf32>
    %230 = vector.multi_reduction <maximumf>, %229, %cst_85 [1] : vector<12x12xf32> to vector<12xf32>
    %231 = vector.shape_cast %230 : vector<12xf32> to vector<12x1xf32>
    %232 = vector.broadcast %231 : vector<12x1xf32> to vector<12x12xf32>
    %233 = arith.subf %229, %232 : vector<12x12xf32>
    %234 = math.exp %233 : vector<12x12xf32>
    %cst_86 = arith.constant dense<0.000000e+00> : vector<12xf32>
    %235 = vector.multi_reduction <add>, %234, %cst_86 [1] : vector<12x12xf32> to vector<12xf32>
    %236 = vector.shape_cast %235 : vector<12xf32> to vector<12x1xf32>
    %237 = tpu.reciprocal %236 {approx = true} : vector<12x1xf32> -> vector<12x1xf32>
    %238 = vector.broadcast %237 : vector<12x1xf32> to vector<12x12xf32>
    %239 = arith.mulf %234, %238 : vector<12x12xf32>
    %cst_87 = arith.constant dense<0.000000e+00> : vector<12x8xf32>
    %240 = tpu.matmul %239, %223, %cst_87 {dimension_numbers = #tpu.dot_dimension_numbers<[1], [0], [0], [1], [0, 0, 1, 1], [], []>} : vector<12x12xf32>, vector<12x8xf32>, vector<12x8xf32> -> vector<12x8xf32>
    %241 = vector.extract_strided_slice %2 {offsets = [24, 0], sizes = [8, 32], strides = [1, 1]} : vector<32x32xf32> to vector<8x32xf32>
    %cst_88 = arith.constant dense<0.000000e+00> : vector<12x32xf32>
    %242 = tpu.matmul %240, %241, %cst_88 {dimension_numbers = #tpu.dot_dimension_numbers<[1], [0], [0], [1], [0, 0, 1, 1], [], []>} : vector<12x8xf32>, vector<8x32xf32>, vector<12x32xf32> -> vector<12x32xf32>
    %243 = arith.addf %220, %242 : vector<12x32xf32>
    %244 = vector.broadcast %3 : vector<1x32xf32> to vector<12x32xf32>
    %245 = arith.addf %243, %244 : vector<12x32xf32>
    %246 = arith.addf %140, %245 : vector<12x32xf32>
    %cst_89 = arith.constant dense<0.000000e+00> : vector<12xf32>
    %247 = vector.multi_reduction <add>, %246, %cst_89 [1] : vector<12x32xf32> to vector<12xf32>
    %248 = vector.shape_cast %247 : vector<12xf32> to vector<12x1xf32>
    %cst_90 = arith.constant 3.200000e+01 : f32
    %249 = vector.broadcast %cst_90 : f32 to vector<12x1xf32>
    %250 = arith.divf %248, %249 : vector<12x1xf32>
    %251 = vector.broadcast %250 : vector<12x1xf32> to vector<12x32xf32>
    %252 = arith.subf %246, %251 : vector<12x32xf32>
    %253 = arith.mulf %252, %252 : vector<12x32xf32>
    %cst_91 = arith.constant dense<0.000000e+00> : vector<12xf32>
    %254 = vector.multi_reduction <add>, %253, %cst_91 [1] : vector<12x32xf32> to vector<12xf32>
    %255 = vector.shape_cast %254 : vector<12xf32> to vector<12x1xf32>
    %cst_92 = arith.constant 3.200000e+01 : f32
    %256 = vector.broadcast %cst_92 : f32 to vector<12x1xf32>
    %257 = arith.divf %255, %256 : vector<12x1xf32>
    %258 = vector.broadcast %250 : vector<12x1xf32> to vector<12x32xf32>
    %259 = arith.subf %246, %258 : vector<12x32xf32>
    %cst_93 = arith.constant 9.99999974E-6 : f32
    %260 = vector.broadcast %cst_93 : f32 to vector<12x1xf32>
    %261 = arith.addf %257, %260 : vector<12x1xf32>
    %262 = math.rsqrt %261 : vector<12x1xf32>
    %263 = vector.broadcast %262 : vector<12x1xf32> to vector<12x32xf32>
    %264 = arith.mulf %259, %263 : vector<12x32xf32>
    %265 = vector.broadcast %4 : vector<1x32xf32> to vector<12x32xf32>
    %266 = arith.mulf %264, %265 : vector<12x32xf32>
    %267 = vector.broadcast %5 : vector<1x32xf32> to vector<12x32xf32>
    %268 = arith.addf %266, %267 : vector<12x32xf32>
    %c1_94 = arith.constant 1 : index
    %c0_95 = arith.constant 0 : index
    %c0_96 = arith.constant 0 : index
    %269 = vector.load %arg10[%c1_94, %c0_95, %c0_96] : memref<2x12x32xf32, #tpu.memory_space<vmem>>, vector<1x12x32xf32>
    %270 = vector.shape_cast %269 : vector<1x12x32xf32> to vector<12x32xf32>
    %271 = vector.shape_cast %268 : vector<12x32xf32> to vector<1x12x32xf32>
    tpu.vector_store %arg10[%c1_94, %c0_95, %c0_96], %271 {strides = array<i32>} : memref<2x12x32xf32, #tpu.memory_space<vmem>>, vector<1x12x32xf32>,
    return
  }
  func.func @transform_0(%arg0: i32) -> (i32, i32, i32) {
    %c0_i32 = arith.constant 0 : i32
    %c0_i32_0 = arith.constant 0 : i32
    %c0_i32_1 = arith.constant 0 : i32
    %c0_i32_2 = arith.constant 0 : i32
    return %c0_i32, %c0_i32_0, %c0_i32_1 : i32, i32, i32
  }
  func.func @transform_1(%arg0: i32) -> (i32, i32, i32) {
    %c0_i32 = arith.constant 0 : i32
    %c0_i32_0 = arith.constant 0 : i32
    %c0_i32_1 = arith.constant 0 : i32
    %c0_i32_2 = arith.constant 0 : i32
    return %c0_i32, %c0_i32_0, %c0_i32_1 : i32, i32, i32
  }
  func.func @transform_2(%arg0: i32) -> (i32, i32, i32) {
    %c0_i32 = arith.constant 0 : i32
    %c0_i32_0 = arith.constant 0 : i32
    %c0_i32_1 = arith.constant 0 : i32
    %c0_i32_2 = arith.constant 0 : i32
    return %c0_i32, %c0_i32_0, %c0_i32_1 : i32, i32, i32
  }
  func.func @transform_3(%arg0: i32) -> (i32, i32) {
    %c0_i32 = arith.constant 0 : i32
    %c0_i32_0 = arith.constant 0 : i32
    %c0_i32_1 = arith.constant 0 : i32
    return %c0_i32, %c0_i32_0 : i32, i32
  }
  func.func @transform_4(%arg0: i32) -> (i32, i32) {
    %c0_i32 = arith.constant 0 : i32
    %c0_i32_0 = arith.constant 0 : i32
    %c0_i32_1 = arith.constant 0 : i32
    return %c0_i32, %c0_i32_0 : i32, i32
  }
  func.func @transform_5(%arg0: i32) -> (i32, i32) {
    %c0_i32 = arith.constant 0 : i32
    %c0_i32_0 = arith.constant 0 : i32
    %c0_i32_1 = arith.constant 0 : i32
    return %c0_i32, %c0_i32_0 : i32, i32
  }
  func.func @transform_6(%arg0: i32) -> (i32, i32) {
    %c0_i32 = arith.constant 0 : i32
    %c0_i32_0 = arith.constant 0 : i32
    %c0_i32_1 = arith.constant 0 : i32
    return %c0_i32, %c0_i32_0 : i32, i32
  }
  func.func @transform_7(%arg0: i32) -> (i32, i32) {
    %c0_i32 = arith.constant 0 : i32
    %c0_i32_0 = arith.constant 0 : i32
    %c0_i32_1 = arith.constant 0 : i32
    return %c0_i32, %c0_i32_0 : i32, i32
  }
  func.func @transform_8(%arg0: i32) -> (i32, i32) {
    %c0_i32 = arith.constant 0 : i32
    %c0_i32_0 = arith.constant 0 : i32
    %c0_i32_1 = arith.constant 0 : i32
    return %c0_i32, %c0_i32_0 : i32, i32
  }
  func.func @transform_9(%arg0: i32) -> (i32, i32, i32) {
    %c0_i32 = arith.constant 0 : i32
    %c0_i32_0 = arith.constant 0 : i32
    %c0_i32_1 = arith.constant 0 : i32
    %c0_i32_2 = arith.constant 0 : i32
    return %c0_i32, %c0_i32_0, %c0_i32_1 : i32, i32, i32
  }
}

</mosaic_0001>

<bundles_post_ra>
// kernel: tpu_custom_call.1
= control target key start
LH: loop header
LB: loop body
LE: loop exit
PB: predicated region body
PF: predicated region fallthrough
CT: control target
= control target key end

     0   :  { %vm49_vm0 = vcmask 261120   ;;  %s1478_s21 = smov 64   ;;  %s1479_s22 = smov 96   ;;  %vm161_vm1 = vcmask 1043456   ;;  %vm90_vm2 = vcmask 64512   ;;  %v1484_v17 = vmov 0   ;;  %s1979_s3 = inlined_call_operand.vmem [shape: f32[32,96], index: 3, kind: input, shape index: {}]   ;;  %s1980_s1 = inlined_call_operand.vmem [shape: f32[2,12,32], index: 1, kind: input, shape index: {}]   ;;  %s1981_s4 = inlined_call_operand.vmem [shape: f32[1,96], index: 4, kind: input, shape index: {}]   ;;  %s1982_s0 = inlined_call_operand.vmem [shape: f32[2,12,32], index: 0, kind: input, shape index: {}]   ;;  %s1983_s2 = inlined_call_operand.vmem [shape: f32[2,1,12], index: 2, kind: input, shape index: {}]   ;;  %s1984_s5 = inlined_call_operand.vmem [shape: f32[32,32], index: 5, kind: input, shape index: {}]   ;;  %s1985_s6 = inlined_call_operand.vmem [shape: f32[1,32], index: 6, kind: input, shape index: {}]   ;;  %s1986_s7 = inlined_call_operand.vmem [shape: f32[1,32], index: 7, kind: input, shape index: {}]   ;;  %s1987_s8 = inlined_call_operand.vmem [shape: f32[1,32], index: 8, kind: input, shape index: {}]   ;;  %s1988_s9 = inlined_call_operand.vmem [shape: f32[2,12,32], index: 9, kind: output, shape index: {}]  }
   0x1   :  { %v1544_v0 = vld [vmem:[%s1979_s3 + $0x18] sm:$0xff]  ;;  %v1549_v1 = vld [vmem:[%s1979_s3 + $0x10] sm:$0xff]  ;;  %v1556_v2 = vld [vmem:[%s1979_s3 + $0x8] sm:$0xff]  ;;  %s1481_s23 = smov 88   ;;  %s1482_s24 = smov 80   ;;  %vm126_vm5 = vcmask 97280  }
   0x2   :  { %1381 = vmatpush.msra.mxu1 %v1544_v0  ;;  %68 = vmatpush.msra.mxu0 %v1544_v0  ;;  %v1563_v3 = vld [vmem:[%s1979_s3] sm:$0xff]  ;;  %v1569_v4 = vld [vmem:[%s1982_s0 + $0x8] sm:$0xf]  ;;  %s1483_s25 = smov 112   ;;  %vm130_vm6 = vcmask 93184   ;;  %s1485_s27 = smov 56  }
   0x3   :  { %v1575_v5 = vld [vmem:[%s1982_s0] sm:$0xff]  ;;  %s1486_s28 = smov 48   ;;  %s1487_s29 = smov 72   ;;  %vm620_vm9 = vcmask 257024  }
   0x4   :  { %1382 = vmatpush.msra.mxu1 %v1549_v1  ;;  %69 = vmatpush.msra.mxu0 %v1549_v1  ;;  %v1586_v6 = vld [vmem:[%s1981_s4] ss:$0 sm:$0xff]  ;;  %s1480_s4 = smov 120   ;;  %s1488_s30 = smov 104  }
   0x5   :  { %v79_v16 = vld [vmem:[%s1983_s2] sm:$0x1] }
   0x6   :  { %1383 = vmatpush.msra.mxu1 %v1556_v2  ;;  %70 = vmatpush.msra.mxu0 %v1556_v2  ;;  %vm80_vm3 = vcmp.gt.f32.partialorder %v79_v16, 0.5 }
   0x7   :  { %v81_v18 = vsel %vm80_vm3, 1, %v1484_v17 }
   0x8   :  { %1384 = vmatpush.msra.mxu1 %v1563_v3  ;;  %71 = vmatpush.msra.mxu0 %v1563_v3  ;;  %v82_v19 = vperm.slane %v81_v18, 0 }
   0x9   :  { %1301 = vmatmul.msk.f32.vlgmr.msra.gmra.mxu1 %vm49_vm0, %v1569_v4  ;;  %1300 = vmatmul.msk.f32.vlgmr.msra.gmra.mxu0 %vm49_vm0, %v1575_v5 }
   0xa   :  { %vm1629_vm4 = vcmp.eq.s32.totalorder %v82_v19, 1 }
  0x86   :  { %v76_v7 = vpop.f32.mrf.mxu1  ;;  %v73_v9 = vpop.f32.mrf.mxu0 }
  0x87   :  { %v1589_v8 = vadd.f32 %v1586_v6, %v76_v7  ;;  %v1596_v10 = vadd.f32 %v1586_v6, %v73_v9 }
  0x89   :  { %152 = vrot.lane.b32.xlu2 %v1589_v8, %s1478_s21  ;;  %88 = vrot.lane.b32.xlu0 %v1589_v8, %s1479_s22 }
  0x91   :  { %150 = vrot.lane.b32.xlu2 %v1596_v10, %s1478_s21  ;;  %86 = vrot.lane.b32.xlu0 %v1596_v10, %s1479_s22 }
  0x99   :  { %187 = vrot.lane.b32.xlu2 %v1596_v10, %s1480_s4  ;;  %193 = vrot.lane.b32.xlu0 %v1589_v8, %s1481_s23 }
  0xa1   :  { %352 = vrot.lane.b32.xlu2 %v1589_v8, %s1482_s24  ;;  %189 = vrot.lane.b32.xlu0 %v1589_v8, %s1480_s4 }
  0xa9   :  { %346 = vrot.lane.b32.xlu2 %v1596_v10, %s1483_s25  ;;  %350 = vrot.lane.b32.xlu0 %v1596_v10, %s1482_s24 }
  0xb1   :  { %348 = vrot.lane.b32.xlu0 %v1589_v8, %s1483_s25 }
  0xe3   :  { %v153_v11 = vpop.permute.xlu2 %152 }
  0xe4   :  { %1306 = vmatpush.msk.msra.mxu2 %vm161_vm1, %v153_v11  ;;  %1385 = vmatpush.msk.msra.mxu3 %vm161_vm1, %v153_v11 }
  0xeb   :  { %v151_v12 = vpop.permute.xlu2 %150 }
  0xec   :  { %179 = vmatpush.msra.mxu2 %v151_v12  ;;  %1386 = vmatpush.msra.mxu3 %v151_v12 }
  0xf3   :  { %v188_v37 = vpop.permute.xlu2 %187 }
  0xfb   :  { %v89_v13 = vpop.permute.xlu0 %88  ;;  %v353_v40 = vpop.permute.xlu2 %352 }
  0xfc   :  { %1302 = vmatpush.xpose.msk.msrb.mxu1 %vm90_vm2, %v89_v13 }
 0x103   :  { %v87_v14 = vpop.permute.xlu0 %86  ;;  %v347_v42 = vpop.permute.xlu2 %346 }
 0x104   :  { %1303 = vmatpush.xpose.msk.msrb.mxu1 %vm90_vm2, %v87_v14 }
 0x107   :  { %1304 = vmatmul.msk.f32.vlgmr.msrb.gmra.mxu1 %vm90_vm2, %v1596_v10 }
 0x10b   :  { %v194_v15 = vpop.permute.xlu0 %193 }
 0x10c   :  { %1309 = vmatpush.xpose.msk.msrb.mxu3 %vm90_vm2, %v194_v15 }
 0x10f   :  { %1305 = vmatmul.msk.f32.gmra.mxu1 %vm90_vm2, %v1589_v8 }
 0x113   :  { %v190_v38 = vpop.permute.xlu0 %189 }
 0x11b   :  { %v351_v41 = vpop.permute.xlu0 %350 }
 0x123   :  { %v349_v43 = vpop.permute.xlu0 %348 }
 0x184   :  { %v116_v20 = vpop.f32.mrf.mxu1 }
 0x185   :  { %v122_v22 = vmul.f32 0.35355338, %v116_v20 }
 0x187   :  { %v124_v23 = vsel %vm1629_vm4, %v122_v22, -1e+10 }
 0x188   :  { %v127_v24 = vsel %vm126_vm5, %v124_v23, -inf }
 0x189   :  { %128 = vmax.xlane.f32.xlu2 %v127_v24 }
 0x18c   :  { %v119_v25 = vpop.f32.mrf.mxu1 }
 0x18d   :  { %v123_v26 = vmul.f32 0.35355338, %v119_v25 }
 0x18f   :  { %v125_v27 = vsel %vm1629_vm4, %v123_v26, -1e+10 }
 0x190   :  { %v131_v28 = vsel %vm130_vm6, %v125_v27, -inf }
 0x191   :  { %132 = vmax.xlane.f32.xlu1 %v131_v28 }
 0x1fc   :  { %v129_v49 = vpop.xlane.xlu2 %128 }
 0x1fd   :  { %v134_v52 = vsub.f32 %v124_v23, %v129_v49 }
 0x1ff   :  { %v136_v55 = vmul.f32 1.442695, %v134_v52 }
 0x204   :  { %v133_v29 = vpop.xlane.xlu1 %132 }
 0x205   :  { %v135_v30 = vsub.f32 %v125_v27, %v133_v29 }
 0x207   :  { %v138_v31 = vmul.f32 1.442695, %v135_v30 }
 0x209   :  { %1404 = vpow2.f32 %v138_v31 }
 0x20f   :  { %v1405_v32 = vpop.eup %1404 }
 0x210   :  { %v143_v33 = vsel %vm130_vm6, %v1405_v32, 0.0 }
 0x211   :  { %144 = vadd.xlane.f32.xlu1 %v143_v33 }
 0x22a   :  { %191 = vrot.lane.b32.xlu1 %v1596_v10, %s1481_s23 }
 0x284   :  { %v145_v34 = vpop.xlane.xlu1 %144 }
 0x285   :  { %1406 = vrcp.f32 %v145_v34 }
 0x286   :  { %1408 = vpow2.f32 %v136_v55 }
 0x28b   :  { %v1407_v35 = vpop.eup %1406 }
 0x28c   :  { %v149_v36 = vmul.f32 %v1407_v35, %v1405_v32  ;;  %v1409_v61 = vpop.eup %1408 }
 0x28d   :  { %v140_v7 = vsel %vm126_vm5, %v1409_v61, 0.0 }
 0x28e   :  { %1308 = vmatmul.msk.f32.vlgmr.msra.gmra.mxu3 %vm126_vm5, %v149_v36 }
 0x29c   :  { %v192_v39 = vpop.permute.xlu1 %191 }
 0x29d   :  { %1310 = vmatpush.xpose.msk.msrb.mxu3 %vm90_vm2, %v192_v39 }
 0x2a0   :  { %1311 = vmatmul.msk.f32.vlgmr.msrb.gmra.mxu3 %vm90_vm2, %v188_v37 }
 0x2a1   :  { %1320 = vmatpush.xpose.msk.msra.mxu3 %vm90_vm2, %v353_v40 }
 0x2a5   :  { %1321 = vmatpush.xpose.msk.msra.mxu3 %vm90_vm2, %v351_v41 }
 0x2a8   :  { %1312 = vmatmul.msk.f32.gmra.mxu3 %vm90_vm2, %v190_v38  ;;  %v1690_v38 = vld [vmem:[%s1984_s5] sm:$0xff] }
 0x2a9   :  { %338 = vmatpush.msra.mxu1 %v1690_v38 }
 0x2b0   :  { %1322 = vmatmul.msk.f32.vlgmr.msra.gmra.mxu3 %vm90_vm2, %v347_v42 }
 0x2b8   :  { %1323 = vmatmul.msk.f32.gmra.mxu3 %vm90_vm2, %v349_v43 }
 0x311   :  { %v1650_v44 = vpop.f32.mrf.mxu3 }
 0x323   :  { %v220_v45 = vpop.f32.mrf.mxu3 }
 0x324   :  { %v226_v46 = vmul.f32 0.35355338, %v220_v45 }
 0x326   :  { %v228_v47 = vsel %vm1629_vm4, %v226_v46, -1e+10 }
 0x327   :  { %v230_v48 = vsel %vm126_vm5, %v228_v47, -inf }
 0x328   :  { %231 = vmax.xlane.f32.xlu1 %v230_v48 }
 0x32b   :  { %v223_v50 = vpop.f32.mrf.mxu3 }
 0x32c   :  { %v227_v51 = vmul.f32 0.35355338, %v223_v50 }
 0x32e   :  { %v229_v53 = vsel %vm1629_vm4, %v227_v51, -1e+10 }
 0x32f   :  { %v233_v54 = vsel %vm130_vm6, %v229_v53, -inf }
 0x330   :  { %234 = vmax.xlane.f32.xlu0 %v233_v54 }
 0x333   :  { %v379_v56 = vpop.f32.mrf.mxu3 }
 0x334   :  { %v385_v57 = vmul.f32 0.35355338, %v379_v56 }
 0x336   :  { %v387_v58 = vsel %vm1629_vm4, %v385_v57, -1e+10 }
 0x337   :  { %v389_v59 = vsel %vm126_vm5, %v387_v58, -inf }
 0x338   :  { %390 = vmax.xlane.f32.xlu2 %v389_v59  ;;  %v38_v59 = vld [vmem:[%s1984_s5 + $0x8] sm:$0xff] }
 0x339   :  { %309 = vmatpush.msrb.mxu0 %v38_v59 }
 0x33b   :  { %v382_v60 = vpop.f32.mrf.mxu3 }
 0x33c   :  { %v386_v62 = vmul.f32 0.35355338, %v382_v60  ;;  %v39_v60 = vld [vmem:[%s1984_s5 + $0x10] sm:$0xff] }
 0x33d   :  { %468 = vmatpush.msra.mxu0 %v39_v60 }
 0x33e   :  { %v388_v63 = vsel %vm1629_vm4, %v386_v62, -1e+10 }
 0x33f   :  { %v392_v9 = vsel %vm130_vm6, %v388_v63, -inf }
 0x340   :  { %141 = vadd.xlane.f32.xlu2 %v140_v7  ;;  %393 = vmax.xlane.f32.xlu1 %v392_v9  ;;  %v1722_v7 = vld [vmem:[%s1982_s0 + $0x10] sm:$0xff] }
 0x344   :  { %252 = vrot.lane.b32.xlu0 %v1596_v10, %s1485_s27 }
 0x359   :  { %254 = vrot.lane.b32.xlu1 %v1589_v8, %s1485_s27 }
 0x39b   :  { %v232_v11 = vpop.xlane.xlu1 %231 }
 0x39c   :  { %v236_v12 = vsub.f32 %v228_v47, %v232_v11 }
 0x39e   :  { %v238_v13 = vmul.f32 1.442695, %v236_v12 }
 0x3a0   :  { %1410 = vpow2.f32 %v238_v13 }
 0x3a3   :  { %v235_v14 = vpop.xlane.xlu0 %234 }
 0x3a4   :  { %v237_v15 = vsub.f32 %v229_v53, %v235_v14 }
 0x3a6   :  { %v1411_v16 = vpop.eup %1410  ;;  %v240_v18 = vmul.f32 1.442695, %v237_v15 }
 0x3a7   :  { %v242_v19 = vsel %vm126_vm5, %v1411_v16, 0.0 }
 0x3a8   :  { %1412 = vpow2.f32 %v240_v18  ;;  %243 = vadd.xlane.f32.xlu0 %v242_v19 }
 0x3ab   :  { %v391_v20 = vpop.xlane.xlu2 %390 }
 0x3ac   :  { %v395_v22 = vsub.f32 %v387_v58, %v391_v20 }
 0x3ae   :  { %v1413_v23 = vpop.eup %1412  ;;  %v397_v24 = vmul.f32 1.442695, %v395_v22 }
 0x3af   :  { %v245_v25 = vsel %vm130_vm6, %v1413_v23, 0.0 }
 0x3b0   :  { %1414 = vpow2.f32 %v397_v24  ;;  %246 = vadd.xlane.f32.xlu2 %v245_v25 }
 0x3b3   :  { %v142_v26 = vpop.xlane.xlu2 %141  ;;  %v394_v27 = vpop.xlane.xlu1 %393 }
 0x3b4   :  { %1416 = vrcp.f32 %v142_v26  ;;  %v396_v28 = vsub.f32 %v388_v63, %v394_v27 }
 0x3b6   :  { %v1415_v29 = vpop.eup %1414  ;;  %v399_v30 = vmul.f32 1.442695, %v396_v28  ;;  %v253_v37 = vpop.permute.xlu0 %252 }
 0x3b7   :  { %v401_v31 = vsel %vm126_vm5, %v1415_v29, 0.0 }
 0x3b8   :  { %1418 = vpow2.f32 %v399_v30  ;;  %402 = vadd.xlane.f32.xlu2 %v401_v31 }
 0x3ba   :  { %v1417_v32 = vpop.eup %1416 }
 0x3bb   :  { %v148_v33 = vmul.f32 %v1417_v32, %v1409_v61 }
 0x3bc   :  { %411 = vrot.lane.b32.xlu0 %v1596_v10, %s1486_s28 }
 0x3bd   :  { %1307 = vmatmul.msk.f32.vlgmr.msra.gmra.mxu2 %vm126_vm5, %v148_v33 }
 0x3be   :  { %v1419_v34 = vpop.eup %1418 }
 0x3bf   :  { %v404_v35 = vsel %vm130_vm6, %v1419_v34, 0.0 }
 0x3c0   :  { %405 = vadd.xlane.f32.xlu1 %v404_v35 }
 0x3c4   :  { %484 = vrot.lane.b32.xlu0 %v1589_v8, %s1487_s29 }
 0x3cb   :  { %v255_v36 = vpop.permute.xlu1 %254 }
 0x3cc   :  { %482 = vrot.lane.b32.xlu0 %v1596_v10, %s1487_s29  ;;  %1313 = vmatpush.msk.msrb.mxu2 %vm161_vm1, %v255_v36 }
 0x3ce   :  { %280 = vmatpush.msrb.mxu2 %v253_v37 }
 0x3d0   :  { %413 = vrot.lane.b32.xlu2 %v1589_v8, %s1486_s28 }
 0x3d4   :  { %480 = vrot.lane.b32.xlu0 %v1589_v8, %s1488_s30 }
 0x3d8   :  { %478 = vrot.lane.b32.xlu2 %v1596_v10, %s1488_s30 }
 0x41b   :  { %v244_v39 = vpop.xlane.xlu0 %243 }
 0x41c   :  { %1420 = vrcp.f32 %v244_v39 }
 0x422   :  { %v1421_v40 = vpop.eup %1420 }
 0x423   :  { %v247_v41 = vpop.xlane.xlu2 %246  ;;  %v250_v42 = vmul.f32 %v1421_v40, %v1411_v16 }
 0x424   :  { %1422 = vrcp.f32 %v247_v41  ;;  %v1342_v41 = vld [vmem:[%s1983_s2 + $0x1] sm:$0x1] }
 0x425   :  { %1314 = vmatmul.msk.f32.vlgmr.msrb.gmra.mxu2 %vm126_vm5, %v250_v42  ;;  %vm715_vm7 = vcmp.gt.f32.partialorder %v1342_v41, 0.5 }
 0x426   :  { %v716_v42 = vsel %vm715_vm7, 1, %v1484_v17 }
 0x42a   :  { %v1423_v43 = vpop.eup %1422 }
 0x42b   :  { %v403_v45 = vpop.xlane.xlu2 %402  ;;  %v251_v46 = vmul.f32 %v1423_v43, %v1413_v23  ;;  %v717_v43 = vperm.slane %v716_v42, 0 }
 0x42c   :  { %1424 = vrcp.f32 %v403_v45 }
 0x42d   :  { %1315 = vmatmul.msk.f32.gmra.mxu2 %vm126_vm5, %v251_v46  ;;  %vm1777_vm8 = vcmp.eq.s32.totalorder %v717_v43, 1 }
 0x42e   :  { %v412_v47 = vpop.permute.xlu0 %411 }
 0x432   :  { %v1425_v48 = vpop.eup %1424 }
 0x433   :  { %v406_v49 = vpop.xlane.xlu1 %405  ;;  %v414_v50 = vpop.permute.xlu2 %413  ;;  %v409_v51 = vmul.f32 %v1425_v48, %v1415_v29 }
 0x434   :  { %1426 = vrcp.f32 %v406_v49  ;;  %1324 = vmatpush.msk.msra.mxu2 %vm161_vm1, %v414_v50 }
 0x436   :  { %439 = vmatpush.msra.mxu2 %v412_v47  ;;  %v485_v52 = vpop.permute.xlu0 %484 }
 0x437   :  { %1325 = vmatmul.msk.f32.vlgmr.msra.gmra.mxu2 %vm126_vm5, %v409_v51  ;;  %1329 = vmatpush.xpose.msk.msrb.mxu1 %vm90_vm2, %v485_v52 }
 0x43a   :  { %v1427_v53 = vpop.eup %1426 }
 0x43b   :  { %v410_v54 = vmul.f32 %v1427_v53, %v1419_v34  ;;  %v479_v57 = vpop.permute.xlu2 %478 }
 0x43e   :  { %v483_v55 = vpop.permute.xlu0 %482 }
 0x43f   :  { %1326 = vmatmul.msk.f32.gmra.mxu2 %vm126_vm5, %v410_v54  ;;  %1330 = vmatpush.xpose.msk.msrb.mxu1 %vm90_vm2, %v483_v55 }
 0x440   :  { %v181_v56 = vpop.f32.mrf.mxu2 }
 0x441   :  { %1318 = vmatmul.msk.f32.vlgmr.msra.gmra.mxu1 %vm90_vm2, %v181_v56 }
 0x446   :  { %v481_v58 = vpop.permute.xlu0 %480 }
 0x449   :  { %1319 = vmatmul.msk.f32.gmra.mxu1 %vm90_vm2, %v1650_v44 }
 0x451   :  { %1331 = vmatmul.msk.f32.vlgmr.msrb.gmra.mxu1 %vm90_vm2, %v479_v57 }
 0x459   :  { %1332 = vmatmul.msk.f32.gmra.mxu1 %vm90_vm2, %v481_v58 }
 0x4a8   :  { %v282_v61 = vpop.f32.mrf.mxu2 }
 0x4a9   :  { %1316 = vmatmul.msk.f32.vlgmr.msrb.gmra.mxu0 %vm90_vm2, %v282_v61 }
 0x4aa   :  { %702 = vmatpush.msrb.mxu0 %v1544_v0  ;;  %v1729_v0 = vld [vmem:[%s1982_s0 + $0x18] sm:$0xf]  ;;  %s1489_s0 = smov 40  }
 0x4ac   :  { %703 = vmatpush.msrb.mxu0 %v1549_v1 }
 0x4ae   :  { %704 = vmatpush.msrb.mxu0 %v1556_v2 }
 0x4b0   :  { %v285_v44 = vpop.f32.mrf.mxu2  ;;  %705 = vmatpush.msrb.mxu0 %v1563_v3 }
 0x4b1   :  { %1317 = vmatmul.msk.f32.gmra.mxu0 %vm90_vm2, %v285_v44 }
 0x4ba   :  { %v441_v62 = vpop.f32.mrf.mxu2 }
 0x4bb   :  { %1327 = vmatmul.msk.f32.vlgmr.msra.gmra.mxu0 %vm90_vm2, %v441_v62 }
 0x4be   :  { %v340_v3 = vpop.f32.mrf.mxu1 }
 0x4c2   :  { %v444_v63 = vpop.f32.mrf.mxu2 }
 0x4c3   :  { %1328 = vmatmul.msk.f32.gmra.mxu0 %vm90_vm2, %v444_v63 }
 0x4c6   :  { %v343_v13 = vpop.f32.mrf.mxu1 }
 0x4cb   :  { %1340 = vmatmul.msk.f32.vlgmr.msrb.gmra.mxu0 %vm49_vm0, %v1722_v7 }
 0x4ce   :  { %v511_v23 = vpop.f32.mrf.mxu1 }
 0x4cf   :  { %v517_v27 = vmul.f32 0.35355338, %v511_v23 }
 0x4d1   :  { %v519_v29 = vsel %vm1629_vm4, %v517_v27, -1e+10 }
 0x4d2   :  { %v521_v30 = vsel %vm126_vm5, %v519_v29, -inf }
 0x4d3   :  { %1341 = vmatmul.msk.f32.gmra.mxu0 %vm49_vm0, %v1729_v0 }
 0x4d6   :  { %v514_v24 = vpop.f32.mrf.mxu1 }
 0x4d7   :  { %v518_v25 = vmul.f32 0.35355338, %v514_v24 }
 0x4d9   :  { %v520_v26 = vsel %vm1629_vm4, %v518_v25, -1e+10 }
 0x4da   :  { %v524_v28 = vsel %vm130_vm6, %v520_v26, -inf }
 0x526   :  { %v311_v1 = vpop.f32.mrf.mxu0 }
 0x527   :  { %v341_v9 = vadd.f32 %v340_v3, %v311_v1 }
 0x52e   :  { %v314_v2 = vpop.f32.mrf.mxu0 }
 0x52f   :  { %v344_v14 = vadd.f32 %v343_v13, %v314_v2 }
 0x538   :  { %v470_v11 = vpop.f32.mrf.mxu0 }
 0x539   :  { %v1733_v12 = vadd.f32 %v470_v11, %v341_v9 }
 0x540   :  { %v473_v15 = vpop.f32.mrf.mxu0 }
 0x541   :  { %v1735_v16 = vadd.f32 %v473_v15, %v344_v14  ;;  %v1817_v15 = vld [vmem:[%s1984_s5 + $0x18] sm:$0xff] }
 0x542   :  { %600 = vmatpush.msrb.mxu2 %v1817_v15 }
 0x548   :  { %v707_v18 = vpop.f32.mrf.mxu0 }
 0x549   :  { %v1738_v19 = vadd.f32 %v1586_v6, %v707_v18 }
 0x54b   :  { %721 = vrot.lane.b32.xlu0 %v1738_v19, %s1479_s22 }
 0x550   :  { %v710_v20 = vpop.f32.mrf.mxu0 }
 0x551   :  { %v1743_v22 = vadd.f32 %v1586_v6, %v710_v20 }
 0x553   :  { %723 = vrot.lane.b32.xlu2 %v1743_v22, %s1479_s22 }
 0x575   :  { %525 = vmax.xlane.f32.xlu0 %v524_v28 }
 0x57c   :  { %522 = vmax.xlane.f32.xlu2 %v521_v30 }
 0x589   :  { %543 = vrot.lane.b32.xlu0 %v1596_v10, %s1489_s0 }
 0x591   :  { %822 = vrot.lane.b32.xlu0 %v1738_v19, %s1481_s23 }
 0x599   :  { %1115 = vrot.lane.b32.xlu0 %v1743_v22, %s1487_s29 }
 0x5a1   :  { %983 = vrot.lane.b32.xlu0 %v1743_v22, %s1482_s24 }
 0x5a9   :  { %981 = vrot.lane.b32.xlu0 %v1738_v19, %s1482_s24 }
 0x5ad   :  { %v724_v6 = vpop.permute.xlu2 %723 }
 0x5ae   :  { %1343 = vmatpush.xpose.msk.msra.mxu1 %vm90_vm2, %v724_v6 }
 0x5b1   :  { %979 = vrot.lane.b32.xlu0 %v1743_v22, %s1483_s25 }
 0x5bd   :  { %v722_v21 = vpop.permute.xlu0 %721 }
 0x5be   :  { %1344 = vmatpush.xpose.msk.msra.mxu1 %vm90_vm2, %v722_v21 }
 0x5c1   :  { %1345 = vmatmul.msk.f32.vlgmr.msra.gmra.mxu1 %vm90_vm2, %v1738_v19 }
 0x5c2   :  { %940 = vmatpush.msrb.mxu1 %v38_v59 }
 0x5c4   :  { %1099 = vmatpush.msra.mxu1 %v39_v60 }
 0x5c9   :  { %1346 = vmatmul.msk.f32.gmra.mxu1 %vm90_vm2, %v1743_v22 }
 0x5e8   :  { %v526_v10 = vpop.xlane.xlu0 %525 }
 0x5e9   :  { %v528_v31 = vsub.f32 %v520_v26, %v526_v10 }
 0x5eb   :  { %v531_v32 = vmul.f32 1.442695, %v528_v31 }
 0x5ed   :  { %1428 = vpow2.f32 %v531_v32 }
 0x5ef   :  { %v523_v33 = vpop.xlane.xlu2 %522 }
 0x5f0   :  { %v527_v34 = vsub.f32 %v519_v29, %v523_v33 }
 0x5f2   :  { %v529_v35 = vmul.f32 1.442695, %v527_v34 }
 0x5f3   :  { %v1429_v36 = vpop.eup %1428 }
 0x5f4   :  { %1430 = vpow2.f32 %v529_v35  ;;  %v536_v37 = vsel %vm130_vm6, %v1429_v36, 0.0 }
 0x5f5   :  { %537 = vadd.xlane.f32.xlu2 %v536_v37 }
 0x5fa   :  { %v1431_v39 = vpop.eup %1430 }
 0x5fb   :  { %v533_v40 = vsel %vm126_vm5, %v1431_v39, 0.0  ;;  %v544_v2 = vpop.permute.xlu0 %543 }
 0x5fc   :  { %534 = vadd.xlane.f32.xlu1 %v533_v40 }
 0x603   :  { %v823_v20 = vpop.permute.xlu0 %822 }
 0x60b   :  { %v1116_v27 = vpop.permute.xlu0 %1115 }
 0x613   :  { %v984_v21 = vpop.permute.xlu0 %983 }
 0x61b   :  { %v982_v31 = vpop.permute.xlu0 %981 }
 0x623   :  { %v980_v34 = vpop.permute.xlu0 %979 }
 0x63e   :  { %v750_v45 = vpop.f32.mrf.mxu1 }
 0x63f   :  { %v756_v47 = vmul.f32 0.35355338, %v750_v45 }
 0x641   :  { %v758_v48 = vsel %vm1777_vm8, %v756_v47, -1e+10 }
 0x642   :  { %v760_v49 = vsel %vm126_vm5, %v758_v48, -inf }
 0x643   :  { %761 = vmax.xlane.f32.xlu1 %v760_v49 }
 0x646   :  { %v753_v50 = vpop.f32.mrf.mxu1 }
 0x647   :  { %v757_v51 = vmul.f32 0.35355338, %v753_v50 }
 0x649   :  { %v759_v52 = vsel %vm1777_vm8, %v757_v51, -1e+10 }
 0x64a   :  { %v763_v17 = vsel %vm130_vm6, %v759_v52, -inf }
 0x64b   :  { %764 = vmax.xlane.f32.xlu1 %v763_v17 }
 0x664   :  { %545 = vrot.lane.b32.xlu1 %v1589_v8, %s1489_s0 }
 0x668   :  { %v538_v62 = vpop.xlane.xlu2 %537 }
 0x66c   :  { %784 = vrot.lane.b32.xlu1 %v1743_v22, %s1478_s21 }
 0x66f   :  { %v535_v53 = vpop.xlane.xlu1 %534 }
 0x674   :  { %782 = vrot.lane.b32.xlu1 %v1738_v19, %s1478_s21 }
 0x67c   :  { %818 = vrot.lane.b32.xlu1 %v1738_v19, %s1480_s4 }
 0x684   :  { %820 = vrot.lane.b32.xlu1 %v1743_v22, %s1480_s4 }
 0x68c   :  { %1113 = vrot.lane.b32.xlu1 %v1738_v19, %s1487_s29 }
 0x694   :  { %977 = vrot.lane.b32.xlu1 %v1738_v19, %s1483_s25 }
 0x6b6   :  { %v762_v8 = vpop.xlane.xlu1 %761 }
 0x6b7   :  { %v766_v54 = vsub.f32 %v758_v48, %v762_v8 }
 0x6b9   :  { %v768_v55 = vmul.f32 1.442695, %v766_v54 }
 0x6bb   :  { %1432 = vpow2.f32 %v768_v55 }
 0x6be   :  { %v765_v56 = vpop.xlane.xlu1 %764 }
 0x6bf   :  { %v767_v57 = vsub.f32 %v759_v52, %v765_v56 }
 0x6c1   :  { %v1433_v58 = vpop.eup %1432  ;;  %v770_v59 = vmul.f32 1.442695, %v767_v57 }
 0x6c2   :  { %v772_v60 = vsel %vm126_vm5, %v1433_v58, 0.0 }
 0x6c3   :  { %1434 = vpow2.f32 %v770_v59  ;;  %773 = vadd.xlane.f32.xlu2 %v772_v60 }
 0x6c4   :  { %1436 = vrcp.f32 %v535_v53 }
 0x6c5   :  { %1438 = vrcp.f32 %v538_v62 }
 0x6c9   :  { %v1435_v61 = vpop.eup %1434 }
 0x6ca   :  { %v775_v44 = vsel %vm130_vm6, %v1435_v61, 0.0  ;;  %v1437_v63 = vpop.eup %1436 }
 0x6cb   :  { %776 = vadd.xlane.f32.xlu2 %v775_v44  ;;  %v541_v3 = vmul.f32 %v1437_v63, %v1431_v39  ;;  %v1439_v9 = vpop.eup %1438 }
 0x6cc   :  { %v542_v13 = vmul.f32 %v1439_v9, %v1429_v36 }
 0x6d6   :  { %v546_v1 = vpop.permute.xlu1 %545 }
 0x6d7   :  { %1333 = vmatpush.msk.msrb.mxu3 %vm161_vm1, %v546_v1 }
 0x6d9   :  { %571 = vmatpush.msrb.mxu3 %v544_v2 }
 0x6da   :  { %1334 = vmatmul.msk.f32.vlgmr.msrb.gmra.mxu3 %vm126_vm5, %v541_v3 }
 0x6de   :  { %v785_v11 = vpop.permute.xlu1 %784 }
 0x6df   :  { %1347 = vmatpush.msk.msra.mxu3 %vm161_vm1, %v785_v11 }
 0x6e2   :  { %1335 = vmatmul.msk.f32.gmra.mxu3 %vm126_vm5, %v542_v13 }
 0x6e3   :  { %824 = vrot.lane.b32.xlu2 %v1743_v22, %s1481_s23 }
 0x6e6   :  { %v783_v14 = vpop.permute.xlu1 %782 }
 0x6e7   :  { %810 = vmatpush.msra.mxu3 %v783_v14 }
 0x6e9   :  { %969 = vmatpush.msrb.mxu3 %v1690_v38 }
 0x6eb   :  { %1109 = vrot.lane.b32.xlu2 %v1738_v19, %s1488_s30 }
 0x6ee   :  { %v819_v18 = vpop.permute.xlu1 %818 }
 0x6f3   :  { %1111 = vrot.lane.b32.xlu2 %v1743_v22, %s1488_s30 }
 0x6f6   :  { %v821_v24 = vpop.permute.xlu1 %820 }
 0x6fe   :  { %v1114_v28 = vpop.permute.xlu1 %1113 }
 0x706   :  { %v978_v33 = vpop.permute.xlu1 %977 }
 0x736   :  { %v774_v23 = vpop.xlane.xlu2 %773 }
 0x737   :  { %1440 = vrcp.f32 %v774_v23 }
 0x73d   :  { %v1441_v25 = vpop.eup %1440 }
 0x73e   :  { %v780_v38 = vmul.f32 %v1441_v25, %v1433_v58  ;;  %v777_v26 = vpop.xlane.xlu2 %776 }
 0x73f   :  { %1442 = vrcp.f32 %v777_v26 }
 0x740   :  { %1348 = vmatmul.msk.f32.vlgmr.msra.gmra.mxu3 %vm126_vm5, %v780_v38 }
 0x741   :  { %1370 = vmatpush.xpose.msk.msra.mxu3 %vm90_vm2, %v1116_v27 }
 0x745   :  { %v1443_v29 = vpop.eup %1442  ;;  %1371 = vmatpush.xpose.msk.msra.mxu3 %vm90_vm2, %v1114_v28 }
 0x746   :  { %v825_v30 = vpop.permute.xlu2 %824  ;;  %v781_v6 = vmul.f32 %v1443_v29, %v1435_v61 }
 0x747   :  { %1350 = vmatpush.xpose.msk.msra.mxu2 %vm90_vm2, %v825_v30  ;;  %v1887_v30 = vld [vmem:[%s1985_s6] ss:$0 sm:$0xff] }
 0x748   :  { %1349 = vmatmul.msk.f32.gmra.mxu3 %vm126_vm5, %v781_v6 }
 0x74b   :  { %1351 = vmatpush.xpose.msk.msra.mxu2 %vm90_vm2, %v823_v20 }
 0x74e   :  { %v1110_v37 = vpop.permute.xlu2 %1109 }
 0x756   :  { %v1112_v39 = vpop.permute.xlu2 %1111 }
 0x75d   :  { %v573_v10 = vpop.f32.mrf.mxu3 }
 0x75e   :  { %1336 = vmatmul.msk.f32.vlgmr.msrb.gmra.mxu2 %vm90_vm2, %v573_v10 }
 0x75f   :  { %1361 = vmatpush.xpose.msk.msrb.mxu2 %vm90_vm2, %v984_v21 }
 0x763   :  { %1362 = vmatpush.xpose.msk.msrb.mxu2 %vm90_vm2, %v982_v31 }
 0x765   :  { %v576_v32 = vpop.f32.mrf.mxu3 }
 0x766   :  { %1337 = vmatmul.msk.f32.gmra.mxu2 %vm90_vm2, %v576_v32 }
 0x76e   :  { %1352 = vmatmul.msk.f32.vlgmr.msra.gmra.mxu2 %vm90_vm2, %v819_v18 }
 0x776   :  { %1353 = vmatmul.msk.f32.gmra.mxu2 %vm90_vm2, %v821_v24 }
 0x77e   :  { %1363 = vmatmul.msk.f32.vlgmr.msrb.gmra.mxu2 %vm90_vm2, %v978_v33 }
 0x786   :  { %1364 = vmatmul.msk.f32.gmra.mxu2 %vm90_vm2, %v980_v34 }
 0x7c3   :  { %v812_v35 = vpop.f32.mrf.mxu3 }
 0x7c4   :  { %1359 = vmatmul.msk.f32.vlgmr.msrb.gmra.mxu3 %vm90_vm2, %v812_v35 }
 0x7cb   :  { %v815_v36 = vpop.f32.mrf.mxu3 }
 0x7cc   :  { %1360 = vmatmul.msk.f32.gmra.mxu3 %vm90_vm2, %v815_v36 }
 0x7d4   :  { %1372 = vmatmul.msk.f32.vlgmr.msra.gmra.mxu3 %vm90_vm2, %v1110_v37 }
 0x7dc   :  { %1373 = vmatmul.msk.f32.gmra.mxu3 %vm90_vm2, %v1112_v39 }
 0x7e1   :  { %v602_v40 = vpop.f32.mrf.mxu2 }
 0x7e2   :  { %v1839_v41 = vadd.f32 %v602_v40, %v1733_v12 }
 0x7e4   :  { %v613_v6 = vadd.f32 %v1887_v30, %v1839_v41 }
 0x7e6   :  { %v1892_v21 = vadd.f32 %v613_v6, %v1575_v5 }
 0x7e9   :  { %v605_v42 = vpop.f32.mrf.mxu2 }
 0x7ea   :  { %v1842_v43 = vadd.f32 %v605_v42, %v1735_v16 }
 0x7f1   :  { %v851_v45 = vpop.f32.mrf.mxu2 }
 0x7f2   :  { %v857_v47 = vmul.f32 0.35355338, %v851_v45 }
 0x7f4   :  { %v859_v48 = vsel %vm1777_vm8, %v857_v47, -1e+10 }
 0x7f5   :  { %v861_v49 = vsel %vm126_vm5, %v859_v48, -inf }
 0x7f6   :  { %862 = vmax.xlane.f32.xlu1 %v861_v49 }
 0x7f9   :  { %v854_v50 = vpop.f32.mrf.mxu2 }
 0x7fa   :  { %v858_v51 = vmul.f32 0.35355338, %v854_v50 }
 0x7fc   :  { %v860_v52 = vsel %vm1777_vm8, %v858_v51, -1e+10 }
 0x7fd   :  { %v864_v12 = vsel %vm130_vm6, %v860_v52, -inf }
 0x7fe   :  { %865 = vmax.xlane.f32.xlu2 %v864_v12 }
 0x801   :  { %v1010_v17 = vpop.f32.mrf.mxu2 }
 0x802   :  { %v1016_v53 = vmul.f32 0.35355338, %v1010_v17 }
 0x804   :  { %v1018_v16 = vsel %vm1777_vm8, %v1016_v53, -1e+10 }
 0x805   :  { %v1020_v8 = vsel %vm126_vm5, %v1018_v16, -inf }
 0x806   :  { %1021 = vmax.xlane.f32.xlu1 %v1020_v8 }
 0x809   :  { %v1013_v58 = vpop.f32.mrf.mxu2 }
 0x80a   :  { %v1017_v61 = vmul.f32 0.35355338, %v1013_v58 }
 0x80c   :  { %v1019_v63 = vsel %vm1777_vm8, %v1017_v61, -1e+10 }
 0x80d   :  { %v1023_v3 = vsel %vm130_vm6, %v1019_v63, -inf }
 0x847   :  { %v1853_v54 = vpop.f32.mrf.mxu3 }
 0x84f   :  { %v1855_v55 = vpop.f32.mrf.mxu3 }
 0x857   :  { %v1142_v56 = vpop.f32.mrf.mxu3 }
 0x858   :  { %v1148_v57 = vmul.f32 0.35355338, %v1142_v56 }
 0x85a   :  { %v1150_v59 = vsel %vm1777_vm8, %v1148_v57, -1e+10 }
 0x85b   :  { %v1152_v60 = vsel %vm126_vm5, %v1150_v59, -inf }
 0x85c   :  { %1153 = vmax.xlane.f32.xlu0 %v1152_v60 }
 0x85f   :  { %v1145_v44 = vpop.f32.mrf.mxu3 }
 0x860   :  { %v1149_v62 = vmul.f32 0.35355338, %v1145_v44 }
 0x862   :  { %v1151_v1 = vsel %vm1777_vm8, %v1149_v62, -1e+10 }
 0x863   :  { %v1155_v2 = vsel %vm130_vm6, %v1151_v1, -inf }
 0x864   :  { %1156 = vmax.xlane.f32.xlu2 %v1155_v2  ;;  %1024 = vmax.xlane.f32.xlu0 %v1023_v3 }
 0x869   :  { %v863_v9 = vpop.xlane.xlu1 %862 }
 0x86a   :  { %v867_v11 = vsub.f32 %v859_v48, %v863_v9  ;;  %v614_v48 = vadd.f32 %v1887_v30, %v1842_v43 }
 0x86c   :  { %v869_v13 = vmul.f32 1.442695, %v867_v11  ;;  %v1904_v50 = vadd.f32 %v614_v48, %v1569_v4 }
 0x86e   :  { %1444 = vpow2.f32 %v869_v13  ;;  %v621_v51 = vsel %vm620_vm9, %v1904_v50, 0.0 }
 0x871   :  { %v866_v14 = vpop.xlane.xlu2 %865 }
 0x872   :  { %v868_v18 = vsub.f32 %v860_v52, %v866_v14 }
 0x874   :  { %v1445_v20 = vpop.eup %1444  ;;  %v871_v23 = vmul.f32 1.442695, %v868_v18 }
 0x875   :  { %v873_v24 = vsel %vm126_vm5, %v1445_v20, 0.0 }
 0x876   :  { %1446 = vpow2.f32 %v871_v23  ;;  %874 = vadd.xlane.f32.xlu1 %v873_v24 }
 0x879   :  { %v1022_v46 = vpop.xlane.xlu1 %1021 }
 0x87a   :  { %v1026_v25 = vsub.f32 %v1018_v16, %v1022_v46 }
 0x87c   :  { %v1867_v38 = vpop.eup %1446  ;;  %v1028_v26 = vmul.f32 1.442695, %v1026_v25  ;;  %885 = vrot.lane.b32.xlu2 %v1743_v22, %s1485_s27  ;;  %v1490_v25 = vmov 32.0  }
 0x87d   :  { %v876_v27 = vsel %vm130_vm6, %v1867_v38, 0.0 }
 0x87e   :  { %1448 = vpow2.f32 %v1028_v26  ;;  %877 = vadd.xlane.f32.xlu0 %v876_v27 }
 0x884   :  { %v1449_v28 = vpop.eup %1448  ;;  %1176 = vrot.lane.b32.xlu2 %v1743_v22, %s1489_s0 }
 0x885   :  { %v1032_v29 = vsel %vm126_vm5, %v1449_v28, 0.0 }
 0x886   :  { %1033 = vadd.xlane.f32.xlu0 %v1032_v29 }
 0x88c   :  { %1044 = vrot.lane.b32.xlu2 %v1743_v22, %s1486_s28  ;;  %v617_v22 = vsel %vm49_vm0, %v1892_v21, 0.0 }
 0x88f   :  { %883 = vrot.lane.b32.xlu1 %v1738_v19, %s1485_s27 }
 0x897   :  { %1174 = vrot.lane.b32.xlu1 %v1738_v19, %s1489_s0 }
 0x89f   :  { %1042 = vrot.lane.b32.xlu1 %v1738_v19, %s1486_s28 }
 0x8b5   :  { %618 = vadd.xlane.f32.xlu2 %v617_v22 }
 0x8cf   :  { %v1154_v10 = vpop.xlane.xlu0 %1153 }
 0x8d0   :  { %v1158_v31 = vsub.f32 %v1150_v59, %v1154_v10 }
 0x8d2   :  { %v1160_v32 = vmul.f32 1.442695, %v1158_v31 }
 0x8d4   :  { %1450 = vpow2.f32 %v1160_v32 }
 0x8d7   :  { %v1157_v19 = vpop.xlane.xlu2 %1156  ;;  %v1025_v33 = vpop.xlane.xlu0 %1024 }
 0x8d8   :  { %v1159_v34 = vsub.f32 %v1151_v1, %v1157_v19  ;;  %v1027_v37 = vsub.f32 %v1019_v63, %v1025_v33 }
 0x8da   :  { %v1451_v35 = vpop.eup %1450  ;;  %v1162_v36 = vmul.f32 1.442695, %v1159_v34  ;;  %v1030_v5 = vmul.f32 1.442695, %v1027_v37 }
 0x8db   :  { %v1164_v39 = vsel %vm126_vm5, %v1451_v35, 0.0 }
 0x8dc   :  { %1452 = vpow2.f32 %v1162_v36  ;;  %1165 = vadd.xlane.f32.xlu0 %v1164_v39 }
 0x8dd   :  { %1454 = vpow2.f32 %v1030_v5 }
 0x8df   :  { %v886_v40 = vpop.permute.xlu2 %885 }
 0x8e0   :  { %1354 = vmatpush.msk.msra.mxu0 %vm161_vm1, %v886_v40 }
 0x8e2   :  { %v1453_v41 = vpop.eup %1452 }
 0x8e3   :  { %v1167_v42 = vsel %vm130_vm6, %v1453_v41, 0.0  ;;  %v1455_v47 = vpop.eup %1454 }
 0x8e4   :  { %1168 = vadd.xlane.f32.xlu0 %v1167_v42  ;;  %v1035_v49 = vsel %vm130_vm6, %v1455_v47, 0.0 }
 0x8e7   :  { %v1177_v45 = vpop.permute.xlu2 %1176 }
 0x8e8   :  { %1374 = vmatpush.msk.msra.mxu2 %vm161_vm1, %v1177_v45 }
 0x8e9   :  { %v875_v52 = vpop.xlane.xlu1 %874 }
 0x8ea   :  { %1456 = vrcp.f32 %v875_v52 }
 0x8ec   :  { %1036 = vadd.xlane.f32.xlu0 %v1035_v49 }
 0x8ef   :  { %v1045_v43 = vpop.permute.xlu2 %1044 }
 0x8f0   :  { %v1457_v17 = vpop.eup %1456 }
 0x8f1   :  { %v878_v12 = vpop.xlane.xlu0 %877  ;;  %v881_v53 = vmul.f32 %v1457_v17, %v1445_v20 }
 0x8f2   :  { %1458 = vrcp.f32 %v878_v12 }
 0x8f4   :  { %622 = vadd.xlane.f32.xlu0 %v621_v51 }
 0x8f8   :  { %v1459_v8 = vpop.eup %1458 }
 0x8f9   :  { %v1034_v4 = vpop.xlane.xlu0 %1033  ;;  %v882_v57 = vmul.f32 %v1459_v8, %v1867_v38 }
 0x8fa   :  { %1460 = vrcp.f32 %v1034_v4 }
 0x900   :  { %v1461_v58 = vpop.eup %1460 }
 0x901   :  { %v884_v16 = vpop.permute.xlu1 %883  ;;  %v1040_v59 = vmul.f32 %v1461_v58, %v1449_v28 }
 0x902   :  { %911 = vmatpush.msra.mxu0 %v884_v16 }
 0x903   :  { %1355 = vmatmul.msk.f32.vlgmr.msra.gmra.mxu0 %vm126_vm5, %v881_v53 }
 0x904   :  { %1365 = vmatpush.msk.msrb.mxu0 %vm161_vm1, %v1045_v43 }
 0x909   :  { %v1175_v56 = vpop.permute.xlu1 %1174 }
 0x90a   :  { %1202 = vmatpush.msra.mxu2 %v1175_v56 }
 0x90b   :  { %1356 = vmatmul.msk.f32.gmra.mxu0 %vm126_vm5, %v882_v57 }
 0x911   :  { %v1043_v60 = vpop.permute.xlu1 %1042 }
 0x912   :  { %1070 = vmatpush.msrb.mxu0 %v1043_v60 }
 0x913   :  { %1366 = vmatmul.msk.f32.vlgmr.msrb.gmra.mxu0 %vm126_vm5, %v1040_v59 }
 0x914   :  { %1231 = vmatpush.msra.mxu0 %v1817_v15 }
 0x94f   :  { %v1166_v61 = vpop.xlane.xlu0 %1165 }
 0x950   :  { %1462 = vrcp.f32 %v1166_v61 }
 0x956   :  { %v1463_v44 = vpop.eup %1462 }
 0x957   :  { %v1172_v62 = vmul.f32 %v1463_v44, %v1451_v35  ;;  %v1169_v63 = vpop.xlane.xlu0 %1168 }
 0x958   :  { %1464 = vrcp.f32 %v1169_v63 }
 0x959   :  { %1375 = vmatmul.msk.f32.vlgmr.msra.gmra.mxu2 %vm126_vm5, %v1172_v62 }
 0x95e   :  { %v1465_v1 = vpop.eup %1464 }
 0x95f   :  { %v1037_v2 = vpop.xlane.xlu0 %1036  ;;  %v1173_v3 = vmul.f32 %v1465_v1, %v1453_v41 }
 0x960   :  { %1466 = vrcp.f32 %v1037_v2 }
 0x961   :  { %1376 = vmatmul.msk.f32.gmra.mxu2 %vm126_vm5, %v1173_v3  ;;  %1468 = vrcp.f32 %v1490_v25 }
 0x966   :  { %v1467_v9 = vpop.eup %1466 }
 0x967   :  { %v1041_v11 = vmul.f32 %v1467_v9, %v1455_v47  ;;  %v1469_v38 = vpop.eup %1468  ;;  %v623_v48 = vpop.xlane.xlu0 %622 }
 0x968   :  { %v625_v26 = vmul.f32 32.0, %v1469_v38  ;;  %vm629_vm10 = vweird.f32 %v1469_v38 }
 0x969   :  { %1367 = vmatmul.msk.f32.gmra.mxu0 %vm126_vm5, %v1041_v11 }
 0x96a   :  { %v626_v6 = vsub.f32 1.0, %v625_v26 }
 0x96c   :  { %v627_v32 = vmul.f32 %v1469_v38, %v626_v6 }
 0x96e   :  { %v628_v34 = vadd.f32 %v1469_v38, %v627_v32 }
 0x970   :  { %v1928_v39 = vsel %vm629_vm10, %v1469_v38, %v628_v34 }
 0x980   :  { %v913_v13 = vpop.f32.mrf.mxu0 }
 0x981   :  { %1357 = vmatmul.msk.f32.vlgmr.msrb.gmra.mxu1 %vm90_vm2, %v913_v13 }
 0x988   :  { %v916_v15 = vpop.f32.mrf.mxu0 }
 0x989   :  { %1358 = vmatmul.msk.f32.gmra.mxu1 %vm90_vm2, %v916_v15  ;;  %v1402_v15 = vld [vmem:[%s1986_s7] ss:$0 sm:$0xff] }
 0x990   :  { %v1072_v14 = vpop.f32.mrf.mxu0 }
 0x991   :  { %1368 = vmatmul.msk.f32.vlgmr.msra.gmra.mxu1 %vm90_vm2, %v1072_v14 }
 0x9dc   :  { %v1204_v18 = vpop.f32.mrf.mxu2 }
 0x9dd   :  { %1377 = vmatmul.msk.f32.vlgmr.msra.gmra.mxu0 %vm90_vm2, %v1204_v18 }
 0x9e4   :  { %v1207_v20 = vpop.f32.mrf.mxu2 }
 0x9e5   :  { %1378 = vmatmul.msk.f32.gmra.mxu0 %vm90_vm2, %v1207_v20  ;;  %v1403_v20 = vld [vmem:[%s1987_s8] ss:$0 sm:$0xff] }
 0x9e6   :  { %v1075_v23 = vpop.f32.mrf.mxu0 }
 0x9e7   :  { %1369 = vmatmul.msk.f32.gmra.mxu1 %vm90_vm2, %v1075_v23 }
 0x9fe   :  { %v942_v24 = vpop.f32.mrf.mxu1 }
 0x9ff   :  { %v972_v28 = vadd.f32 %v1853_v54, %v942_v24  ;;  %v619_v54 = vpop.xlane.xlu2 %618 }
 0xa00   :  { %v631_v41 = vmul.f32 %v1928_v39, %v619_v54 }
 0xa02   :  { %v633_v45 = vsub.f32 %v1892_v21, %v631_v41 }
 0xa04   :  { %v635_v49 = vmul.f32 %v633_v45, %v633_v45 }
 0xa06   :  { %v945_v46 = vpop.f32.mrf.mxu1  ;;  %v637_v52 = vsel %vm49_vm0, %v635_v49, 0.0 }
 0xa07   :  { %v975_v35 = vadd.f32 %v1855_v55, %v945_v46  ;;  %v632_v55 = vmul.f32 %v1928_v39, %v623_v48 }
 0xa09   :  { %v634_v51 = vsub.f32 %v1904_v50, %v632_v55 }
 0xa0b   :  { %v636_v12 = vmul.f32 %v634_v51, %v634_v51 }
 0xa0d   :  { %v640_v17 = vsel %vm620_vm9, %v636_v12, 0.0 }
 0xa0e   :  { %v1101_v27 = vpop.f32.mrf.mxu1 }
 0xa0f   :  { %v1107_v29 = vadd.f32 %v1101_v27, %v972_v28 }
 0xa5a   :  { %v1233_v22 = vpop.f32.mrf.mxu0 }
 0xa5b   :  { %v1239_v10 = vadd.f32 %v1233_v22, %v1107_v29 }
 0xa5d   :  { %v1241_v31 = vadd.f32 %v1887_v30, %v1239_v10 }
 0xa5f   :  { %v1243_v19 = vadd.f32 %v1722_v7, %v1241_v31 }
 0xa61   :  { %v1245_v33 = vsel %vm49_vm0, %v1243_v19, 0.0 }
 0xa62   :  { %1246 = vadd.xlane.f32.xlu1 %v1245_v33  ;;  %v1236_v5 = vpop.f32.mrf.mxu0 }
 0xa64   :  { %v1104_v36 = vpop.f32.mrf.mxu1 }
 0xa65   :  { %v1108_v37 = vadd.f32 %v1104_v36, %v975_v35 }
 0xa67   :  { %v1240_v40 = vadd.f32 %v1236_v5, %v1108_v37 }
 0xa69   :  { %v1242_v42 = vadd.f32 %v1887_v30, %v1240_v40 }
 0xa6b   :  { %v1244_v7 = vadd.f32 %v1729_v0, %v1242_v42 }
 0xa6d   :  { %v1248_v47 = vsel %vm620_vm9, %v1244_v7, 0.0 }
 0xa6e   :  { %1249 = vadd.xlane.f32.xlu0 %v1248_v47 }
 0xa76   :  { %638 = vadd.xlane.f32.xlu0 %v637_v52 }
 0xa7e   :  { %641 = vadd.xlane.f32.xlu0 %v640_v17 }
 0xad5   :  { %v1247_v30 = vpop.xlane.xlu1 %1246 }
 0xad6   :  { %v1251_v0 = vmul.f32 %v1247_v30, %v1928_v39 }
 0xad8   :  { %v1940_v21 = vsub.f32 %v1243_v19, %v1251_v0 }
 0xada   :  { %v1255_v53 = vmul.f32 %v1940_v21, %v1940_v21 }
 0xadc   :  { %v1257_v16 = vsel %vm49_vm0, %v1255_v53, 0.0 }
 0xadd   :  { %1258 = vadd.xlane.f32.xlu0 %v1257_v16 }
 0xae1   :  { %v1250_v43 = vpop.xlane.xlu0 %1249 }
 0xae2   :  { %v1252_v50 = vmul.f32 %v1250_v43, %v1928_v39 }
 0xae4   :  { %v1946_v4 = vsub.f32 %v1244_v7, %v1252_v50 }
 0xae6   :  { %v1256_v8 = vmul.f32 %v1946_v4, %v1946_v4 }
 0xae8   :  { %v1260_v56 = vsel %vm620_vm9, %v1256_v8, 0.0 }
 0xae9   :  { %1261 = vadd.xlane.f32.xlu2 %v1260_v56  ;;  %v639_v57 = vpop.xlane.xlu0 %638 }
 0xaea   :  { %v643_v58 = vmul.f32 %v639_v57, %v1928_v39 }
 0xaec   :  { %v645_v59 = vadd.f32 1e-05, %v643_v58 }
 0xaee   :  { %1470 = vrsqrt.f32 %v645_v59  ;;  %vm653_vm12 = vweird.f32 %v645_v59 }
 0xaf1   :  { %v642_v60 = vpop.xlane.xlu0 %641 }
 0xaf2   :  { %v644_v61 = vmul.f32 %v642_v60, %v1928_v39 }
 0xaf4   :  { %v1471_v44 = vpop.eup %1470  ;;  %v646_v62 = vadd.f32 1e-05, %v644_v61 }
 0xaf5   :  { %v648_v63 = vmul.f32 %v1471_v44, %v645_v59  ;;  %vm654_vm11 = vweird.f32 %v1471_v44 }
 0xaf6   :  { %1472 = vrsqrt.f32 %v646_v62  ;;  %vm655_vm13 = vmor %vm653_vm12, %vm654_vm11  ;;  %vm663_vm15 = vweird.f32 %v646_v62 }
 0xaf7   :  { %v649_v1 = vmul.f32 %v1471_v44, %v648_v63 }
 0xaf9   :  { %v650_v2 = vmul.f32 0.5, %v649_v1 }
 0xafb   :  { %v651_v3 = vsub.f32 1.5, %v650_v2 }
 0xafc   :  { %v1473_v9 = vpop.eup %1472 }
 0xafd   :  { %v652_v11 = vmul.f32 %v1471_v44, %v651_v3  ;;  %v658_v13 = vmul.f32 %v1473_v9, %v646_v62  ;;  %vm664_vm14 = vweird.f32 %v1473_v9 }
 0xafe   :  { %vm665_vm1 = vmor %vm663_vm15, %vm664_vm14 }
 0xaff   :  { %v656_v14 = vsel %vm655_vm13, %v1471_v44, %v652_v11  ;;  %v659_v18 = vmul.f32 %v1473_v9, %v658_v13 }
 0xb00   :  { %v667_v23 = vmul.f32 %v656_v14, %v633_v45 }
 0xb01   :  { %v660_v24 = vmul.f32 0.5, %v659_v18 }
 0xb02   :  { %v672_v46 = vmul.f32 %v1402_v15, %v667_v23 }
 0xb03   :  { %v661_v25 = vsub.f32 1.5, %v660_v24 }
 0xb04   :  { %v677_v38 = vadd.f32 %v1403_v20, %v672_v46 }
 0xb05   :  { %v662_v26 = vmul.f32 %v1473_v9, %v661_v25 }
 0xb06   :  { %679 = vst.msk [vmem:[%s1988_s9] sm:$0xff] %vm49_vm0, %v677_v38 }
 0xb07   :  { %v666_v27 = vsel %vm665_vm1, %v1473_v9, %v662_v26 }
 0xb08   :  { %v668_v28 = vmul.f32 %v666_v27, %v634_v51 }
 0xb0a   :  { %v673_v29 = vmul.f32 %v1402_v15, %v668_v28 }
 0xb0c   :  { %v678_v6 = vadd.f32 %v1403_v20, %v673_v29 }
 0xb0e   :  { %680 = vst.msk [vmem:[%s1988_s9 + $0x8] sm:$0xf] %vm620_vm9, %v678_v6 }
 0xb50   :  { %v1259_v22 = vpop.xlane.xlu0 %1258 }
 0xb51   :  { %v1263_v10 = vmul.f32 %v1259_v22, %v1928_v39 }
 0xb53   :  { %v1265_v31 = vadd.f32 1e-05, %v1263_v10 }
 0xb55   :  { %1474 = vrsqrt.f32 %v1265_v31  ;;  %vm1273_vm3 = vweird.f32 %v1265_v31 }
 0xb5b   :  { %v1475_v32 = vpop.eup %1474 }
 0xb5c   :  { %v1268_v19 = vmul.f32 %v1475_v32, %v1265_v31  ;;  %v1262_v33 = vpop.xlane.xlu2 %1261  ;;  %vm1274_vm2 = vweird.f32 %v1475_v32 }
 0xb5d   :  { %v1264_v34 = vmul.f32 %v1262_v33, %v1928_v39  ;;  %vm1275_vm4 = vmor %vm1273_vm3, %vm1274_vm2 }
 0xb5e   :  { %v1269_v35 = vmul.f32 %v1475_v32, %v1268_v19 }
 0xb5f   :  { %v1266_v36 = vadd.f32 1e-05, %v1264_v34 }
 0xb60   :  { %v1270_v37 = vmul.f32 0.5, %v1269_v35 }
 0xb61   :  { %1476 = vrsqrt.f32 %v1266_v36  ;;  %vm1283_vm6 = vweird.f32 %v1266_v36 }
 0xb62   :  { %v1271_v54 = vsub.f32 1.5, %v1270_v37 }
 0xb64   :  { %v1272_v5 = vmul.f32 %v1475_v32, %v1271_v54 }
 0xb66   :  { %v1276_v40 = vsel %vm1275_vm4, %v1475_v32, %v1272_v5 }
 0xb67   :  { %v1477_v41 = vpop.eup %1476  ;;  %v1287_v42 = vmul.f32 %v1276_v40, %v1940_v21 }
 0xb68   :  { %v1278_v7 = vmul.f32 %v1477_v41, %v1266_v36  ;;  %vm1284_vm5 = vweird.f32 %v1477_v41 }
 0xb69   :  { %v1289_v45 = vmul.f32 %v1402_v15, %v1287_v42  ;;  %vm1285_vm7 = vmor %vm1283_vm6, %vm1284_vm5 }
 0xb6a   :  { %v1279_v47 = vmul.f32 %v1477_v41, %v1278_v7 }
 0xb6b   :  { %v1291_v48 = vadd.f32 %v1403_v20, %v1289_v45 }
 0xb6c   :  { %v1280_v55 = vmul.f32 0.5, %v1279_v47 }
 0xb6d   :  { %1379 = vst.msk [vmem:[%s1988_s9 + $0x10] sm:$0xff] %vm49_vm0, %v1291_v48 }
 0xb6e   :  { %v1281_v39 = vsub.f32 1.5, %v1280_v55 }
 0xb70   :  { %v1282_v49 = vmul.f32 %v1477_v41, %v1281_v39 }
 0xb72   :  { %v1286_v51 = vsel %vm1285_vm7, %v1477_v41, %v1282_v49 }
 0xb73   :  { %v1288_v52 = vmul.f32 %v1286_v51, %v1946_v4 }
 0xb75   :  { %v1290_v12 = vmul.f32 %v1402_v15, %v1288_v52 }
 0xb77   :  { %v1292_v17 = vadd.f32 %v1403_v20, %v1290_v12 }
 0xb79   :  { %1380 = vst.msk [vmem:[%s1988_s9 + $0x18] sm:$0xf] %vm620_vm9, %v1292_v17 }

</bundles_post_ra>
